<compile_context>
chip_gen: v7x
topology: tpu7x:2x2x1
jax: 0.10.0
libtpu: 0.0.40
codegen_flags: <defaults>
</compile_context>

<pallas_src>
import functools
import math

import jax
import jax.numpy as jnp
from jax.experimental import pallas as pl
from jax.experimental.pallas import tpu as pltpu


def _round_up(x, m):
    return -(-x // m) * m


# ---------------------------------------------------------------------------
# Fused Pallas kernel: one (batch element, time tile) per grid step
# ---------------------------------------------------------------------------
def _mhldsa_kernel(q_ref, v_ref, w1t_ref, w2x_ref, b2x_ref, w3t_ref, wot_ref,
                   o_ref, *, context, tm, halo):
    c = context
    f = q_ref.shape[-1]
    t_win = tm + halo

    q = q_ref[0].astype(jnp.bfloat16)                       # (TM, F) bf16

    # Value window for this time tile: rows [i*TM, i*TM + TM + halo) of the
    # zero-padded (by (c-1)//2 at the front) value; aligned dynamic slice.
    start = pl.multiple_of(pl.program_id(1) * tm, tm)
    vwin = v_ref[0, pl.ds(start, t_win), :]                 # (TM+halo, F) bf16

    # ---- query path: w1 -> ReLU -> expanded grouped 1x1 conv (w2) ------ MXU
    q1 = jnp.dot(q, w1t_ref[...], preferred_element_type=jnp.float32)
    r = jnp.maximum(q1, 0.0).astype(jnp.bfloat16)
    # w2x is block-diagonal; column block j (width F) holds the context-slot-j
    # logit of each head replicated across that head's d_k lanes.
    logits = jnp.dot(r, w2x_ref[...], preferred_element_type=jnp.float32)
    logits = logits + b2x_ref[...]                          # (TM, c*F) f32

    # ---- value path: w3 over the haloed window -------------------------- MXU
    v_full = jnp.dot(vwin, w3t_ref[...], preferred_element_type=jnp.float32)

    # ---- softmax max over the c context slots (per time & head), f32 -- VPU
    m = logits[:, 0:f]
    for j in range(1, c):
        m = jnp.maximum(m, logits[:, j * f:(j + 1) * f])

    # ---- fused exp + local-context combine; reciprocal deferred --------- EUP
    # v_full row (t + j) is the w3-projected value at original frame
    # t + j - (c-1)//2, zero outside the valid range (chunkwise zero pad).
    acc = jnp.zeros((tm, f), jnp.float32)
    denom = jnp.zeros((tm, f), jnp.float32)
    for j in range(c):
        p = jnp.exp(logits[:, j * f:(j + 1) * f] - m)
        denom = denom + p
        if j == 0:
            v_j = v_full[0:tm, :]
        else:
            # sublane shift by j on the XLU (rows [j, j+TM) of v_full),
            # avoiding a misaligned-slice relayout copy.
            v_j = pltpu.roll(v_full, shift=t_win - j, axis=0)[0:tm, :]
        acc = acc + p * v_j
    ctx = acc * pl.reciprocal(denom, approx=True)

    # ---- output projection (w_out) --------------------------------------- MXU
    out = jnp.dot(ctx.astype(jnp.bfloat16), wot_ref[...],
                  preferred_element_type=jnp.float32)
    o_ref[0] = out.astype(o_ref.dtype)


# ---------------------------------------------------------------------------
# Wrapper
# ---------------------------------------------------------------------------
def mh_local_dense_synthesizer_attention(params, query, key, value, mask=None,
                                         *, n_head, context_size, tile_m=256):
    """Forward of MHLocalDenseSynthesizerAttention (inference).

    query/value: (B, T, n_feat) float32.  `key` and `mask` are dummies in the
    reference module and ignored.
    """
    # TODO(synk): nn.Dropout on the attention weights is treated as identity
    # (inference mode); no dropout mask is generated.
    del key, mask
    b, t, f = query.shape
    h, c = n_head, context_size
    assert f % h == 0 and c % 2 == 1
    d_k = f // h
    n_l = (c - 1) // 2

    # Time tile (bf16-layout friendly: multiple of 16).
    tm = min(tile_m, _round_up(t, 16))
    tm = _round_up(tm, 16)
    n_tiles = -(-t // tm)
    t_pad = n_tiles * tm
    halo = _round_up(max(2 * n_l, 1), 16)
    t_v = t_pad + halo

    # Query stays f32 in HBM (cast to bf16 inside the kernel); only pad when
    # the time axis is ragged w.r.t. the tile (keeps padded rows zero).
    if t_pad == t:
        q_in = query
    else:
        q_in = jnp.pad(query, ((0, 0), (0, t_pad - t), (0, 0)))

    # Value needs a halo copy anyway (chunkwise zero padding, and w3 has no
    # bias so projecting the zero rows reproduces torch's zero context pad);
    # cast to bf16 while copying to halve its HBM traffic.
    v_p = jnp.pad(value, ((0, 0), (n_l, t_v - t - n_l), (0, 0))
                  ).astype(jnp.bfloat16)

    # Linear layers (use_bias=False, module default): y = x @ W^T
    w1t = params["w1"].T.astype(jnp.bfloat16)
    w3t = params["w3"].T.astype(jnp.bfloat16)
    wot = params["w_out"].T.astype(jnp.bfloat16)

    # Grouped Conv1d(k=1, groups=h) -> block-diagonal (F, c*F) weight with the
    # per-head logits replicated over the head's d_k output lanes:
    #   column (j*F + g*d_k + k)  <-  conv output channel (g*c + j)
    w2_r = params["w2_w"][:, :, 0].reshape(h, c, d_k)            # [g, j, k_in]
    eye_h = jnp.eye(h, dtype=jnp.float32)
    w2x = jnp.broadcast_to(
        w2_r.transpose(0, 2, 1)[:, :, :, None, None]             # [g,k_in,j,1,1]
        * eye_h[:, None, None, :, None],                         # [g,1,1,g',1]
        (h, d_k, c, h, d_k)).reshape(f, c * f).astype(jnp.bfloat16)
    b_hc = params["w2_b"].reshape(h, c)                          # [g, j]
    b2x = jnp.broadcast_to(b_hc.T[:, :, None], (c, h, d_k)
                           ).reshape(1, c * f).astype(jnp.float32)

    kernel = functools.partial(_mhldsa_kernel, context=c, tm=tm, halo=halo)
    out = pl.pallas_call(
        kernel,
        out_shape=jax.ShapeDtypeStruct((b, t_pad, f), jnp.float32),
        grid=(b, n_tiles),
        in_specs=[
            pl.BlockSpec((1, tm, f), lambda bi, ti: (bi, ti, 0)),   # query tile
            pl.BlockSpec((1, t_v, f), lambda bi, ti: (bi, 0, 0)),   # value (resident per batch)
            pl.BlockSpec((f, f), lambda bi, ti: (0, 0)),            # w1^T
            pl.BlockSpec((f, c * f), lambda bi, ti: (0, 0)),        # expanded w2
            pl.BlockSpec((1, c * f), lambda bi, ti: (0, 0)),        # expanded b2
            pl.BlockSpec((f, f), lambda bi, ti: (0, 0)),            # w3^T
            pl.BlockSpec((f, f), lambda bi, ti: (0, 0)),            # w_out^T
        ],
        out_specs=pl.BlockSpec((1, tm, f), lambda bi, ti: (bi, ti, 0)),
        compiler_params=pltpu.CompilerParams(
            dimension_semantics=("parallel", "parallel"),
            vmem_limit_bytes=48 * 1024 * 1024),
    )(q_in, v_p, w1t, w2x, b2x, w3t, wot)
    return out if t_pad == t else out[:, :t, :]


# ---------------------------------------------------------------------------
# Pure-JAX f32 reference (mirrors the PyTorch forward, dropout = identity)
# ---------------------------------------------------------------------------
def mhldsa_reference(params, query, value, *, n_head, context):
    b, t, f = query.shape
    h, c = n_head, context
    d_k = f // h
    n_l = (c - 1) // 2
    r = jnp.maximum(query @ params["w1"].T, 0.0)
    w2 = params["w2_w"][:, :, 0].reshape(h, c, d_k)
    logits = jnp.einsum("bthk,hjk->bthj", r.reshape(b, t, h, d_k), w2)
    logits = logits + params["w2_b"].reshape(h, c)
    attn = jax.nn.softmax(logits, axis=-1)                       # (B,T,h,c)
    v = value @ params["w3"].T
    v_pad = jnp.pad(v, ((0, 0), (n_l, n_l), (0, 0)))
    idx = jnp.arange(t)[:, None] + jnp.arange(c)[None, :]
    v_cw = v_pad[:, idx, :].reshape(b, t, c, h, d_k)
    out = jnp.einsum("bthj,btjhk->bthk", attn, v_cw).reshape(b, t, f)
    return out @ params["w_out"].T


# ---------------------------------------------------------------------------
# Deterministic parameters (PyTorch-default-style init, use_bias=False)
# ---------------------------------------------------------------------------
def make_params(key, n_feat, n_head, context):
    d_k = n_feat // n_head
    ks = jax.random.split(key, 5)
    s_lin = 1.0 / math.sqrt(n_feat)
    s_conv = 1.0 / math.sqrt(d_k)
    return {
        "w1": jax.random.uniform(ks[0], (n_feat, n_feat), jnp.float32,
                                 -s_lin, s_lin),
        "w3": jax.random.uniform(ks[1], (n_feat, n_feat), jnp.float32,
                                 -s_lin, s_lin),
        "w_out": jax.random.uniform(ks[2], (n_feat, n_feat), jnp.float32,
                                    -s_lin, s_lin),
        "w2_w": jax.random.uniform(ks[3], (n_head * context, d_k, 1),
                                   jnp.float32, -s_conv, s_conv),
        "w2_b": jax.random.uniform(ks[4], (n_head * context,),
                                   jnp.float32, -s_conv, s_conv),
    }


if __name__ == "__main__":
    B, T, N_FEAT = 2, 64, 256
    N_HEAD, CONTEXT = 4, 3

    root = jax.random.PRNGKey(0)
    pkey, qkey, vkey = jax.random.split(root, 3)
    params = make_params(pkey, N_FEAT, N_HEAD, CONTEXT)
    query = jax.random.normal(qkey, (B, T, N_FEAT), dtype=jnp.float32)
    value = jax.random.normal(vkey, (B, T, N_FEAT), dtype=jnp.float32)

    fwd = jax.jit(functools.partial(mh_local_dense_synthesizer_attention,
                                    n_head=N_HEAD, context_size=CONTEXT))
    out = jax.block_until_ready(fwd(params, query, query, value))
    assert out.shape == (B, T, N_FEAT), out.shape
    assert bool(jnp.all(jnp.isfinite(out)))

    # Correctness check against the f32 reference (tolerance covers the bf16
    # MXU operands and the approximate reciprocal in the softmax).
    ref = mhldsa_reference(params, query, value, n_head=N_HEAD,
                           context=CONTEXT)
    err = float(jnp.max(jnp.abs(out - ref)))
    scale = float(jnp.max(jnp.abs(ref)))
    assert err <= 0.08 * scale + 1e-3, (err, scale)
    print("KERNEL_OK")
</pallas_src>

<mosaic_0001>
module attributes {stable_mosaic.version = 11 : i64} {
  func.func @_mhldsa_kernel(%arg0: i32, %arg1: i32, %arg2: memref<1x64x256xf32, #tpu.memory_space<vmem>>, %arg3: memref<1x80x256xbf16, #tpu.memory_space<vmem>>, %arg4: memref<256x256xbf16, #tpu.memory_space<vmem>>, %arg5: memref<256x768xbf16, #tpu.memory_space<vmem>>, %arg6: memref<1x768xf32, #tpu.memory_space<vmem>>, %arg7: memref<256x256xbf16, #tpu.memory_space<vmem>>, %arg8: memref<256x256xbf16, #tpu.memory_space<vmem>>, %arg9: memref<1x64x256xf32, #tpu.memory_space<vmem>>) attributes {dimension_semantics = [#tpu.dimension_semantics<parallel>, #tpu.dimension_semantics<parallel>], iteration_bounds = array<i64: 2, 1>, scalar_prefetch = 0 : i64, scratch_operands = 0 : i64, tpu.core_type = #tpu.core_type<tc>, window_params = [{transform_indices = @transform_0, window_bounds = array<i64: 1, 64, 256>}, {transform_indices = @transform_1, window_bounds = array<i64: 1, 80, 256>}, {pipeline_mode = #tpu.pipeline_mode<synchronous>, transform_indices = @transform_2, window_bounds = array<i64: 256, 256>}, {pipeline_mode = #tpu.pipeline_mode<synchronous>, transform_indices = @transform_3, window_bounds = array<i64: 256, 768>}, {pipeline_mode = #tpu.pipeline_mode<synchronous>, transform_indices = @transform_4, window_bounds = array<i64: 1, 768>}, {pipeline_mode = #tpu.pipeline_mode<synchronous>, transform_indices = @transform_5, window_bounds = array<i64: 256, 256>}, {pipeline_mode = #tpu.pipeline_mode<synchronous>, transform_indices = @transform_6, window_bounds = array<i64: 256, 256>}, {transform_indices = @transform_7, window_bounds = array<i64: 1, 64, 256>}]} {
    %c0 = arith.constant 0 : index
    %c0_0 = arith.constant 0 : index
    %c0_1 = arith.constant 0 : index
    %0 = vector.load %arg2[%c0, %c0_0, %c0_1] : memref<1x64x256xf32, #tpu.memory_space<vmem>>, vector<1x64x256xf32>
    %1 = vector.shape_cast %0 : vector<1x64x256xf32> to vector<64x256xf32>
    %2 = arith.truncf %1 : vector<64x256xf32> to vector<64x256xbf16>
    %c64_i32 = arith.constant 64 : i32
    %3 = arith.muli %arg1, %c64_i32 : i32
    %4 = tpu.assume_multiple %3, 64 : i32
    %c0_2 = arith.constant 0 : index
    %5 = arith.index_cast %4 : i32 to index
    %c0_3 = arith.constant 0 : index
    %6 = vector.load %arg3[%c0_2, %5, %c0_3] : memref<1x80x256xbf16, #tpu.memory_space<vmem>>, vector<1x80x256xbf16>
    %7 = vector.shape_cast %6 : vector<1x80x256xbf16> to vector<80x256xbf16>
    %c0_4 = arith.constant 0 : index
    %c0_5 = arith.constant 0 : index
    %8 = vector.load %arg4[%c0_4, %c0_5] : memref<256x256xbf16, #tpu.memory_space<vmem>>, vector<256x256xbf16>
    %cst = arith.constant dense<0.000000e+00> : vector<64x256xf32>
    %9 = tpu.matmul %2, %8, %cst {dimension_numbers = #tpu.dot_dimension_numbers<[1], [0], [0], [1], [0, 0, 1, 1], [], []>} : vector<64x256xbf16>, vector<256x256xbf16>, vector<64x256xf32> -> vector<64x256xf32>
    %cst_6 = arith.constant 0.000000e+00 : f32
    %10 = vector.broadcast %cst_6 : f32 to vector<64x256xf32>
    %11 = arith.maximumf %9, %10 : vector<64x256xf32>
    %12 = arith.truncf %11 : vector<64x256xf32> to vector<64x256xbf16>
    %c0_7 = arith.constant 0 : index
    %c0_8 = arith.constant 0 : index
    %13 = vector.load %arg5[%c0_7, %c0_8] : memref<256x768xbf16, #tpu.memory_space<vmem>>, vector<256x768xbf16>
    %cst_9 = arith.constant dense<0.000000e+00> : vector<64x768xf32>
    %14 = tpu.matmul %12, %13, %cst_9 {dimension_numbers = #tpu.dot_dimension_numbers<[1], [0], [0], [1], [0, 0, 1, 1], [], []>} : vector<64x256xbf16>, vector<256x768xbf16>, vector<64x768xf32> -> vector<64x768xf32>
    %c0_10 = arith.constant 0 : index
    %c0_11 = arith.constant 0 : index
    %15 = vector.load %arg6[%c0_10, %c0_11] : memref<1x768xf32, #tpu.memory_space<vmem>>, vector<1x768xf32>
    %16 = vector.broadcast %15 : vector<1x768xf32> to vector<64x768xf32>
    %17 = arith.addf %14, %16 : vector<64x768xf32>
    %c0_12 = arith.constant 0 : index
    %c0_13 = arith.constant 0 : index
    %18 = vector.load %arg7[%c0_12, %c0_13] : memref<256x256xbf16, #tpu.memory_space<vmem>>, vector<256x256xbf16>
    %cst_14 = arith.constant dense<0.000000e+00> : vector<80x256xf32>
    %19 = tpu.matmul %7, %18, %cst_14 {dimension_numbers = #tpu.dot_dimension_numbers<[1], [0], [0], [1], [0, 0, 1, 1], [], []>} : vector<80x256xbf16>, vector<256x256xbf16>, vector<80x256xf32> -> vector<80x256xf32>
    %20 = vector.extract_strided_slice %17 {offsets = [0, 0], sizes = [64, 256], strides = [1, 1]} : vector<64x768xf32> to vector<64x256xf32>
    %21 = vector.extract_strided_slice %17 {offsets = [0, 256], sizes = [64, 256], strides = [1, 1]} : vector<64x768xf32> to vector<64x256xf32>
    %22 = arith.maximumf %20, %21 : vector<64x256xf32>
    %23 = vector.extract_strided_slice %17 {offsets = [0, 512], sizes = [64, 256], strides = [1, 1]} : vector<64x768xf32> to vector<64x256xf32>
    %24 = arith.maximumf %22, %23 : vector<64x256xf32>
    %cst_15 = arith.constant 0.000000e+00 : f32
    %25 = vector.broadcast %cst_15 : f32 to vector<64x256xf32>
    %cst_16 = arith.constant 0.000000e+00 : f32
    %26 = vector.broadcast %cst_16 : f32 to vector<64x256xf32>
    %27 = vector.extract_strided_slice %17 {offsets = [0, 0], sizes = [64, 256], strides = [1, 1]} : vector<64x768xf32> to vector<64x256xf32>
    %28 = arith.subf %27, %24 : vector<64x256xf32>
    %29 = math.exp %28 : vector<64x256xf32>
    %30 = arith.addf %26, %29 : vector<64x256xf32>
    %31 = vector.extract_strided_slice %19 {offsets = [0, 0], sizes = [64, 256], strides = [1, 1]} : vector<80x256xf32> to vector<64x256xf32>
    %32 = arith.mulf %29, %31 : vector<64x256xf32>
    %33 = arith.addf %25, %32 : vector<64x256xf32>
    %34 = vector.extract_strided_slice %17 {offsets = [0, 256], sizes = [64, 256], strides = [1, 1]} : vector<64x768xf32> to vector<64x256xf32>
    %35 = arith.subf %34, %24 : vector<64x256xf32>
    %36 = math.exp %35 : vector<64x256xf32>
    %37 = arith.addf %30, %36 : vector<64x256xf32>
    %c79_i32 = arith.constant 79 : i32
    %38 = tpu.dynamic_rotate %19 by %c79_i32 dim 0 : vector<80x256xf32>, i32 -> vector<80x256xf32>
    %39 = vector.extract_strided_slice %38 {offsets = [0, 0], sizes = [64, 256], strides = [1, 1]} : vector<80x256xf32> to vector<64x256xf32>
    %40 = arith.mulf %36, %39 : vector<64x256xf32>
    %41 = arith.addf %33, %40 : vector<64x256xf32>
    %42 = vector.extract_strided_slice %17 {offsets = [0, 512], sizes = [64, 256], strides = [1, 1]} : vector<64x768xf32> to vector<64x256xf32>
    %43 = arith.subf %42, %24 : vector<64x256xf32>
    %44 = math.exp %43 : vector<64x256xf32>
    %45 = arith.addf %37, %44 : vector<64x256xf32>
    %c78_i32 = arith.constant 78 : i32
    %46 = tpu.dynamic_rotate %19 by %c78_i32 dim 0 : vector<80x256xf32>, i32 -> vector<80x256xf32>
    %47 = vector.extract_strided_slice %46 {offsets = [0, 0], sizes = [64, 256], strides = [1, 1]} : vector<80x256xf32> to vector<64x256xf32>
    %48 = arith.mulf %44, %47 : vector<64x256xf32>
    %49 = arith.addf %41, %48 : vector<64x256xf32>
    %50 = tpu.reciprocal %45 {approx = true} : vector<64x256xf32> -> vector<64x256xf32>
    %51 = arith.mulf %49, %50 : vector<64x256xf32>
    %52 = arith.truncf %51 : vector<64x256xf32> to vector<64x256xbf16>
    %c0_17 = arith.constant 0 : index
    %c0_18 = arith.constant 0 : index
    %53 = vector.load %arg8[%c0_17, %c0_18] : memref<256x256xbf16, #tpu.memory_space<vmem>>, vector<256x256xbf16>
    %cst_19 = arith.constant dense<0.000000e+00> : vector<64x256xf32>
    %54 = tpu.matmul %52, %53, %cst_19 {dimension_numbers = #tpu.dot_dimension_numbers<[1], [0], [0], [1], [0, 0, 1, 1], [], []>} : vector<64x256xbf16>, vector<256x256xbf16>, vector<64x256xf32> -> vector<64x256xf32>
    %c0_20 = arith.constant 0 : index
    %c0_21 = arith.constant 0 : index
    %c0_22 = arith.constant 0 : index
    %55 = vector.load %arg9[%c0_20, %c0_21, %c0_22] : memref<1x64x256xf32, #tpu.memory_space<vmem>>, vector<1x64x256xf32>
    %56 = vector.shape_cast %55 : vector<1x64x256xf32> to vector<64x256xf32>
    %57 = vector.shape_cast %54 : vector<64x256xf32> to vector<1x64x256xf32>
    tpu.vector_store %arg9[%c0_20, %c0_21, %c0_22], %57 {strides = array<i32>} : memref<1x64x256xf32, #tpu.memory_space<vmem>>, vector<1x64x256xf32>,
    return
  }
  func.func @transform_0(%arg0: i32, %arg1: i32) -> (i32, i32, i32) {
    %c0_i32 = arith.constant 0 : i32
    %c0_i32_0 = arith.constant 0 : i32
    return %arg0, %arg1, %c0_i32 : i32, i32, i32
  }
  func.func @transform_1(%arg0: i32, %arg1: i32) -> (i32, i32, i32) {
    %c0_i32 = arith.constant 0 : i32
    %c0_i32_0 = arith.constant 0 : i32
    %c0_i32_1 = arith.constant 0 : i32
    return %arg0, %c0_i32, %c0_i32_0 : i32, i32, i32
  }
  func.func @transform_2(%arg0: i32, %arg1: i32) -> (i32, i32) {
    %c0_i32 = arith.constant 0 : i32
    %c0_i32_0 = arith.constant 0 : i32
    %c0_i32_1 = arith.constant 0 : i32
    return %c0_i32, %c0_i32_0 : i32, i32
  }
  func.func @transform_3(%arg0: i32, %arg1: i32) -> (i32, i32) {
    %c0_i32 = arith.constant 0 : i32
    %c0_i32_0 = arith.constant 0 : i32
    %c0_i32_1 = arith.constant 0 : i32
    return %c0_i32, %c0_i32_0 : i32, i32
  }
  func.func @transform_4(%arg0: i32, %arg1: i32) -> (i32, i32) {
    %c0_i32 = arith.constant 0 : i32
    %c0_i32_0 = arith.constant 0 : i32
    %c0_i32_1 = arith.constant 0 : i32
    return %c0_i32, %c0_i32_0 : i32, i32
  }
  func.func @transform_5(%arg0: i32, %arg1: i32) -> (i32, i32) {
    %c0_i32 = arith.constant 0 : i32
    %c0_i32_0 = arith.constant 0 : i32
    %c0_i32_1 = arith.constant 0 : i32
    return %c0_i32, %c0_i32_0 : i32, i32
  }
  func.func @transform_6(%arg0: i32, %arg1: i32) -> (i32, i32) {
    %c0_i32 = arith.constant 0 : i32
    %c0_i32_0 = arith.constant 0 : i32
    %c0_i32_1 = arith.constant 0 : i32
    return %c0_i32, %c0_i32_0 : i32, i32
  }
  func.func @transform_7(%arg0: i32, %arg1: i32) -> (i32, i32, i32) {
    %c0_i32 = arith.constant 0 : i32
    %c0_i32_0 = arith.constant 0 : i32
    return %arg0, %arg1, %c0_i32 : i32, i32, i32
  }
}

</mosaic_0001>

<bundles_post_ra>
// kernel: squeeze.1
= control target key start
LH: loop header
LB: loop body
LE: loop exit
PB: predicated region body
PF: predicated region fallthrough
CT: control target
= control target key end

     0   :  { %vm3_vm0 = vcmask 523264   ;;  %s73_s0 = inlined_call_operand.vmem [shape: f32[12,64], index: 0, kind: input, shape index: {}]   ;;  %s74_s1 = inlined_call_operand.vmem [shape: f32[4,3,64], index: 1, kind: output, shape index: {}]  }
   0x1   :  { %v2_v0 = vld [vmem:[%s73_s0] sm:$0xff]   ;;  %v41_v1 = vld [vmem:[%s73_s0 + $0x8] sm:$0xf]  }
   0x2   :  { %4 = vst.msk [vmem:[#allocation0] sm:$0x7] %vm3_vm0, %v2_v0   ;;  %6 = vst.msk [vmem:[#allocation0 + $0x5] sm:$0x38] %vm3_vm0, %v2_v0  }
   0x3   :  { %8 = vst.msk [vmem:[#allocation0 + $0xa] sm:$0xc0] %vm3_vm0, %v2_v0   ;;  %13 = vst.msk [vmem:[#allocation0 + $0x12] ss:$6 sm:$0x3] %vm3_vm0, %v41_v1  }
   0x4   :  { %15 = vst.msk [vmem:[#allocation0 + $0x17] sm:$0xc] %vm3_vm0, %v41_v1  }
   0x9   :  { %v19_v2 = vld [vmem:[#allocation0] sm:$0xf]  ;;  %v23_v3 = vld [vmem:[#allocation0 + $0x8] sm:$0xf] }
   0xa   :  { %v28_v4 = vld [vmem:[#allocation0 + $0x10] sm:$0xf]  ;;  %21 = vst [vmem:[%s74_s1] sm:$0xf] %v19_v2  ;;  %42 = vst [vmem:[%s74_s1 + $0x4] sm:$0xf] %v23_v3 }
   0xb   :  { %43 = vst [vmem:[%s74_s1 + $0x8] sm:$0xf] %v28_v4  ;;  %v34_v5 = vld [vmem:[#allocation0 + $0x18] sm:$0xf] }
   0xc   :  { %44 = vst [vmem:[%s74_s1 + $0xc] sm:$0xf] %v34_v5 }

// kernel: mh_local_dense_synthesizer_attention.1
= control target key start
LH: loop header
LB: loop body
LE: loop exit
PB: predicated region body
PF: predicated region fallthrough
CT: control target
= control target key end

     0   :  { %12 = vsyncpa [#allocation3], 0  ;;  %s4992_s0 = inlined_call_operand.vmem [shape: f32[2,64,256], index: 0, kind: input, shape index: {}]   ;;  %s4993_s1 = inlined_call_operand.vmem [shape: bf16[2,80,256], index: 1, kind: input, shape index: {}]   ;;  %s4994_s2 = inlined_call_operand.vmem [shape: bf16[256,256], index: 2, kind: input, shape index: {}]   ;;  %s4995_s3 = inlined_call_operand.vmem [shape: bf16[256,768], index: 3, kind: input, shape index: {}]   ;;  %s4996_s4 = inlined_call_operand.vmem [shape: f32[1,768], index: 4, kind: input, shape index: {}]   ;;  %s4997_s5 = inlined_call_operand.vmem [shape: bf16[256,256], index: 5, kind: input, shape index: {}]   ;;  %s4998_s6 = inlined_call_operand.vmem [shape: bf16[256,256], index: 6, kind: input, shape index: {}]   ;;  %s4999_s7 = inlined_call_operand.hbm [shape: f32[2,64,256], index: 7, kind: output, shape index: {}]  }
   0x1   :  { %14 = vsyncpa [#allocation3 + $0x1], 0  ;;  %s3466_s24 = smov 0   ;;  %s3468_s25 = smov 0  }
   0x2   :  { %s3470_s26 = smov 0   ;;  %s3472_s27 = smov 0  }
   0x3   :  { %s3474_s28 = smov 0   ;;  %s3476_s29 = smov 0  }
   0x4 LB: > { %s2636_s30 = sadd.s32 4294967295, %s3421_s29   ;;  %s2637_s8 = sadd.s32 4294967294, %s3421_s29   ;;  %s3421_s29 = sphi %s3476_s29, %s20_s29   ;;  %s3417_s28 = sphi %s3474_s28, %s5087_s28   ;;  %s3413_s27 = sphi %s3472_s27, %s5086_s27   ;;  %s3409_s26 = sphi %s3470_s26, %s5085_s26   ;;  %s3405_s25 = sphi %s3468_s25, %s5084_s25   ;;  %s3401_s24 = sphi %s3466_s24, %s5083_s24  }
   0x5   : > { %s32_s9 = sadd.s32 1, %s3417_s28  ;;  %s200_s10 = sadd.s32 1, %s3409_s26 }
   0x6   : > { %p34_p0 = scmp.ge.s32.totalorder %s32_s9, 2  ;;  %p210_p1 = scmp.ne.s32.totalorder %s3409_s26, %s3405_s25 }
   0x7   : > { %p211_p2 = scmp.eq.s32.totalorder %s2636_s30, 1  ;;  %p216_p3 = scmp.ne.s32.totalorder %s3405_s25, %s3401_s24 }
   0x8   : > { %s5089_s9 = smov (%p34_p0, %s32_s9), 0  ;;  %p217_p5 = scmp.eq.s32.totalorder %s2637_s8, 1 }
   0x9   : > { %p3506_p4 = por %p211_p2, %p210_p1  ;;  %s195_s12 = ssub.s32 %s3417_s28, %s5089_s9 }
   0xa   : > { %p2640_p6 = scmp.ge.s32.totalorder %s3421_s29, 1  ;;  %p198_p7 = scmp.eq.s32.totalorder %s195_s12, 0 }
   0xb   : > { %p3513_p8 = por %p217_p5, %p216_p3  ;;  %p272_p9 = scmp.lt.s32.totalorder %s3421_s29, 3 }
   0xc   : > { %s3519_s14 = scalar_select %p198_p7, %s3409_s26, %s200_s10  }
   0xd   : > { %p273_p10 = pnand %p2640_p6, %p272_p9 }
   0xf   : > { %276 = sbr.rel (%p273_p10) target bundleno = 939 (0x3ab), region = 48 }
  0x16   : > { %v2912_v0 = vld [vmem:[%s4994_s2 + $0x4] ss:$8 sps:$4 sm:$0xff]   ;;  %v2914_v1 = vld [vmem:[%s4994_s2] ss:$8 sps:$4 sm:$0xff]   ;;  %v2915_v2 = vld [vmem:[%s4994_s2 + $0x14] ss:$8 sps:$4 sm:$0xff]  }
  0x17   : > { %563 = vmatprep.subr.bf16.mxu0 %v2912_v0  ;;  %v2917_v3 = vld [vmem:[%s4994_s2 + $0x10] ss:$8 sps:$4 sm:$0xff]   ;;  %v2918_v4 = vld [vmem:[%s4994_s2 + $0x24] ss:$8 sps:$4 sm:$0xff]   ;;  %v2920_v5 = vld [vmem:[%s4994_s2 + $0x20] ss:$8 sps:$4 sm:$0xff]  }
  0x18   : > { %564 = vmatpush1.bf16.msra.mxu0 %v2914_v1  ;;  %p315_p11 = scmp.lt.s32.totalorder %s3413_s27, 1  ;;  %v2921_v6 = vld [vmem:[%s4994_s2 + $0x34] ss:$8 sps:$4 sm:$0xff]   ;;  %v2923_v7 = vld [vmem:[%s4994_s2 + $0x30] ss:$8 sps:$4 sm:$0xff]   ;;  %s311_s17 = sand.u32 1, %s3405_s25  }
  0x19   : > { %565 = vmatprep.subr.bf16.mxu0 %v2915_v2  ;;  %v2924_v8 = vld [vmem:[%s4994_s2 + $0x44] ss:$8 sps:$4 sm:$0xff]   ;;  %v2926_v9 = vld [vmem:[%s4994_s2 + $0x40] ss:$8 sps:$4 sm:$0xff]   ;;  %v2927_v10 = vld [vmem:[%s4994_s2 + $0x54] ss:$8 sps:$4 sm:$0xff]  }
  0x1a   : > { %s3547_s18 = scalar_select %p315_p11, %s3413_s27, 1  ;;  %v2929_v11 = vld [vmem:[%s4994_s2 + $0x50] ss:$8 sps:$4 sm:$0xff]   ;;  %v2930_v12 = vld [vmem:[%s4994_s2 + $0x64] ss:$8 sps:$4 sm:$0xff]  }
  0x1b   : > { %v2932_v16 = vld [vmem:[%s4994_s2 + $0x60] ss:$8 sps:$4 sm:$0xff]   ;;  %v2933_v17 = vld [vmem:[%s4994_s2 + $0x74] ss:$8 sps:$4 sm:$0xff]   ;;  %v2935_v18 = vld [vmem:[%s4994_s2 + $0x70] ss:$8 sps:$4 sm:$0xff]  }
  0x1c   : > { %566 = vmatpush1.bf16.msra.mxu0 %v2917_v3  ;;  %s2852_s23 = sshll.u32 %s3547_s18, 7  ;;  %v2960_v19 = vld [vmem:[%s4995_s3 + $0x4] ss:$24 sps:$4 sm:$0xff]   ;;  %v2962_v20 = vld [vmem:[%s4995_s3] ss:$24 sps:$4 sm:$0xff]   ;;  %s2854_s22 = smul.u32 80, %s3547_s18 }
  0x1d   : > { %567 = vmatprep.subr.bf16.mxu0 %v2918_v4  ;;  %s3562_s15 = scalar_lea.vmem %s4992_s0, %s2852_s23  ;;  %v2936_v21 = vld [vmem:[%s4994_s2 + $0x84] ss:$8 sps:$4 sm:$0xff]   ;;  %1268 = vmatprep.subr.bf16.mxu1 %v2960_v19  ;;  %v2968_v23 = vld [vmem:[%s4995_s3 + $0x30] ss:$24 sps:$4 sm:$0xff]   ;;  %v2939_v25 = vld [vmem:[%s4994_s2 + $0x94] ss:$8 sps:$4 sm:$0xff]  }
  0x1e   : > { %v332_v13 = vld [vmem:[%s3562_s15 + $0x8] sm:$0xff]  ;;  %v334_v14 = vld [vmem:[%s3562_s15 + $0x18] sm:$0xff]  ;;  %1269 = vmatpush1.bf16.msra.mxu1 %v2962_v20  ;;  %v331_v52 = vld [vmem:[%s3562_s15] sm:$0xff]  ;;  %s3845_s30 = scalar_lea.vmem %s4993_s1, %s2854_s22  ;;  %s2641_s19 = sshll.u32 %s311_s17, 7 }
  0x1f   : > { %v348_v15 = vpack.c.bf16 %v334_v14, %v332_v13  ;;  %v2966_v22 = vld [vmem:[%s4995_s3 + $0x34] ss:$24 sps:$4 sm:$0xff]   ;;  %v2938_v24 = vld [vmem:[%s4994_s2 + $0x80] ss:$8 sps:$4 sm:$0xff]   ;;  %v2972_v26 = vld [vmem:[%s4995_s3 + $0x64] ss:$24 sps:$4 sm:$0xff]  }
  0x20   : > { %568 = vmatpush1.bf16.msra.mxu0 %v2920_v5  ;;  %1270 = vmatprep.subr.bf16.mxu1 %v2966_v22  ;;  %v2974_v27 = vld [vmem:[%s4995_s3 + $0x60] ss:$24 sps:$4 sm:$0xff]   ;;  %v2978_v29 = vld [vmem:[%s4995_s3 + $0x94] ss:$24 sps:$4 sm:$0xff]   ;;  %v2980_v31 = vld [vmem:[%s4995_s3 + $0x90] ss:$24 sps:$4 sm:$0xff]  }
  0x21   : > { %569 = vmatprep.subr.bf16.mxu0 %v2921_v6  ;;  %595 = vmatprep.mubr.bf16.mxu0 %v348_v15  ;;  %v2941_v28 = vld [vmem:[%s4994_s2 + $0x90] ss:$8 sps:$4 sm:$0xff]   ;;  %v2942_v30 = vld [vmem:[%s4994_s2 + $0xa4] ss:$8 sps:$4 sm:$0xff]   ;;  %v2944_v32 = vld [vmem:[%s4994_s2 + $0xa0] ss:$8 sps:$4 sm:$0xff]  }
  0x22   : > { %1271 = vmatpush1.bf16.msra.mxu1 %v2968_v23  ;;  %v2984_v33 = vld [vmem:[%s4995_s3 + $0xc4] ss:$24 sps:$4 sm:$0xff]   ;;  %v2986_v35 = vld [vmem:[%s4995_s3 + $0xc0] ss:$24 sps:$4 sm:$0xff]   ;;  %v2990_v37 = vld [vmem:[%s4995_s3 + $0xf4] ss:$24 sps:$4 sm:$0xff]  }
  0x23   : > { %1272 = vmatprep.subr.bf16.mxu1 %v2972_v26  ;;  %v2945_v34 = vld [vmem:[%s4994_s2 + $0xb4] ss:$8 sps:$4 sm:$0xff]   ;;  %v2947_v36 = vld [vmem:[%s4994_s2 + $0xb0] ss:$8 sps:$4 sm:$0xff]   ;;  %v2948_v38 = vld [vmem:[%s4994_s2 + $0xc4] ss:$8 sps:$4 sm:$0xff]  }
  0x24   : > { %570 = vmatpush1.bf16.msra.mxu0 %v2923_v7  ;;  %v2992_v39 = vld [vmem:[%s4995_s3 + $0xf0] ss:$24 sps:$4 sm:$0xff]   ;;  %v2996_v41 = vld [vmem:[%s4995_s3 + $0x124] ss:$24 sps:$4 sm:$0xff]   ;;  %v2998_v43 = vld [vmem:[%s4995_s3 + $0x120] ss:$24 sps:$4 sm:$0xff]  }
  0x25   : > { %571 = vmatprep.subr.bf16.mxu0 %v2924_v8  ;;  %v2950_v40 = vld [vmem:[%s4994_s2 + $0xc0] ss:$8 sps:$4 sm:$0xff]   ;;  %v2951_v42 = vld [vmem:[%s4994_s2 + $0xd4] ss:$8 sps:$4 sm:$0xff]   ;;  %v2953_v44 = vld [vmem:[%s4994_s2 + $0xd0] ss:$8 sps:$4 sm:$0xff]  }
  0x26   : > { %1273 = vmatpush1.bf16.msra.mxu1 %v2974_v27  ;;  %v3002_v45 = vld [vmem:[%s4995_s3 + $0x154] ss:$24 sps:$4 sm:$0xff]   ;;  %v3004_v47 = vld [vmem:[%s4995_s3 + $0x150] ss:$24 sps:$4 sm:$0xff]   ;;  %v3008_v49 = vld [vmem:[%s4995_s3 + $0x184] ss:$24 sps:$4 sm:$0xff]  }
  0x27   : > { %1274 = vmatprep.subr.bf16.mxu1 %v2978_v29  ;;  %v2954_v46 = vld [vmem:[%s4994_s2 + $0xe4] ss:$8 sps:$4 sm:$0xff]   ;;  %v2956_v48 = vld [vmem:[%s4994_s2 + $0xe0] ss:$8 sps:$4 sm:$0xff]   ;;  %v2957_v50 = vld [vmem:[%s4994_s2 + $0xf4] ss:$8 sps:$4 sm:$0xff]  }
  0x28   : > { %572 = vmatpush1.bf16.msra.mxu0 %v2926_v9  ;;  %v2959_v51 = vld [vmem:[%s4994_s2 + $0xf0] ss:$8 sps:$4 sm:$0xff]   ;;  %v336_v54 = vld [vmem:[%s3562_s15 + $0x28] sm:$0xff]  ;;  %v2971_v63 = vld [vmem:[%s4995_s3 + $0x3c] ss:$24 sps:$4 sm:$0xff]   ;;  %s4917_s20 = scalar_lea.vmem [#allocation2], %s2641_s19 }
  0x29   : > { %573 = vmatprep.subr.bf16.mxu0 %v2927_v10  ;;  %v333_v53 = vld [vmem:[%s3562_s15 + $0x10] sm:$0xff]  ;;  %v3010_v55 = vld [vmem:[%s4995_s3 + $0x180] ss:$24 sps:$4 sm:$0xff]   ;;  %v2965_v58 = vld [vmem:[%s4995_s3 + $0xc] ss:$24 sps:$4 sm:$0xff]   ;;  %s2853_s21 = sshll.u32 %s3413_s27, 11 }
  0x2a   : > { %1275 = vmatpush1.bf16.msra.mxu1 %v2980_v31  ;;  %v338_v56 = vld [vmem:[%s3562_s15 + $0x38] sm:$0xff]  ;;  %v3014_v57 = vld [vmem:[%s4995_s3 + $0x1b4] ss:$24 sps:$4 sm:$0xff]   ;;  %v347_v59 = vpack.c.bf16 %v333_v53, %v331_v52  ;;  %v2963_v60 = vld [vmem:[%s4995_s3 + $0x8] ss:$24 sps:$4 sm:$0xff]   ;;  %s2540_s22 = sshll.u32 %s4917_s20, 4  ;;  %s4939_s22 = int_to_ptr.vmem [resolvable:$true] %s2540_s22 }
  0x2b   : > { %1276 = vmatprep.subr.bf16.mxu1 %v2984_v33  ;;  %v3016_v61 = vld [vmem:[%s4995_s3 + $0x1b0] ss:$24 sps:$4 sm:$0xff]   ;;  %v350_v62 = vpack.c.bf16 %v338_v56, %v336_v54  ;;  %v3020_v0 = vld [vmem:[%s4995_s3 + $0x1e4] ss:$24 sps:$4 sm:$0xff]   ;;  %v3022_v1 = vld [vmem:[%s4995_s3 + $0x1e0] ss:$24 sps:$4 sm:$0xff]  }
  0x2c   : > { %574 = vmatpush1.bf16.msra.mxu0 %v2929_v11  ;;  %v335_v2 = vld [vmem:[%s3562_s15 + $0x20] sm:$0xff]  ;;  %v337_v3 = vld [vmem:[%s3562_s15 + $0x30] sm:$0xff]  ;;  %v340_v6 = vld [vmem:[%s3562_s15 + $0x48] sm:$0xff]  ;;  %s4946_s27 = scalar_lea.sflag [#allocation3], %s311_s17  ;;  %s3343_s8 = scalar_lea.vmem %s4939_s22, 2048 }
  0x2d   : > { %575 = vmatprep.subr.bf16.mxu0 %v2930_v12  ;;  %v2969_v4 = vld [vmem:[%s4995_s3 + $0x38] ss:$24 sps:$4 sm:$0xff]   ;;  %v3026_v5 = vld [vmem:[%s4995_s3 + $0x214] ss:$24 sps:$4 sm:$0xff]   ;;  %v2975_v10 = vld [vmem:[%s4995_s3 + $0x68] ss:$24 sps:$4 sm:$0xff]   ;;  %v349_v11 = vpack.c.bf16 %v337_v3, %v335_v2  ;;  %p3344_p12 = scmp.ne.s32.totalorder %s4939_s22, %s3343_s8 }
  0x2e   : > { %1277 = vmatpush1.bf16.msra.mxu1 %v2986_v35  ;;  %v342_v7 = vld [vmem:[%s3562_s15 + $0x58] sm:$0xff]  ;;  %v2977_v8 = vld [vmem:[%s4995_s3 + $0x6c] ss:$24 sps:$4 sm:$0xff]   ;;  %v3028_v9 = vld [vmem:[%s4995_s3 + $0x210] ss:$24 sps:$4 sm:$0xff]   ;;  %s3423_s10 = smov [#allocation2]  }
  0x2f   : > { %1278 = vmatprep.subr.bf16.mxu1 %v2990_v37  ;;  %v2983_v12 = vld [vmem:[%s4995_s3 + $0x9c] ss:$24 sps:$4 sm:$0xff]   ;;  %v352_v14 = vpack.c.bf16 %v342_v7, %v340_v6  ;;  %v3034_v15 = vld [vmem:[%s4995_s3 + $0x240] ss:$24 sps:$4 sm:$0xff]   ;;  %v344_v20 = vld [vmem:[%s3562_s15 + $0x68] sm:$0xff]  ;;  %p3345_p13 = pnand %p3344_p12, %p3506_p4  ;;  %s3347_s18 = sshll.u32 %s3423_s10, 4  ;;  %s3348_s18 = int_to_ptr.vmem [resolvable:$false] %s3347_s18 }
  0x30   : > { %576 = vmatpush1.bf16.msra.mxu0 %v2932_v16  ;;  %v3032_v13 = vld [vmem:[%s4995_s3 + $0x244] ss:$24 sps:$4 sm:$0xff]   ;;  %v3038_v19 = vld [vmem:[%s4995_s3 + $0x274] ss:$24 sps:$4 sm:$0xff]   ;;  %v3040_v23 = vld [vmem:[%s4995_s3 + $0x270] ss:$24 sps:$4 sm:$0xff]   ;;  %p3350_p1 = scmp.lt.s32.totalorder %s4939_s22, %s3348_s18 }
  0x31   : > { %577 = vmatprep.subr.bf16.mxu0 %v2933_v17  ;;  %v339_v16 = vld [vmem:[%s3562_s15 + $0x40] sm:$0xff]  ;;  %v341_v17 = vld [vmem:[%s3562_s15 + $0x50] sm:$0xff]  ;;  %p3346_p0 = pneg %p3345_p13  ;;  %s3349_s12 = scalar_lea.vmem %s3348_s18, 4096 }
  0x32   : > { %1279 = vmatpush1.bf16.msra.mxu1 %v2992_v39  ;;  %v2989_v22 = vld [vmem:[%s4995_s3 + $0xcc] ss:$24 sps:$4 sm:$0xff]   ;;  %v2995_v26 = vld [vmem:[%s4995_s3 + $0xfc] ss:$24 sps:$4 sm:$0xff]   ;;  %v3005_v35 = vld [vmem:[%s4995_s3 + $0x158] ss:$24 sps:$4 sm:$0xff]   ;;  %p3351_p2 = scmp.lt.s32.totalorder %s3349_s12, %s3343_s8 }
  0x33   : > { %1280 = vmatprep.subr.bf16.mxu1 %v2996_v41  ;;  %v345_v29 = vld [vmem:[%s3562_s15 + $0x70] sm:$0xff]  ;;  %v3001_v31 = vld [vmem:[%s4995_s3 + $0x12c] ss:$24 sps:$4 sm:$0xff]   ;;  %v3011_v37 = vld [vmem:[%s4995_s3 + $0x188] ss:$24 sps:$4 sm:$0xff]  }
  0x34   : > { %578 = vmatpush1.bf16.msra.mxu0 %v2935_v18  ;;  %v2981_v18 = vld [vmem:[%s4995_s3 + $0x98] ss:$24 sps:$4 sm:$0xff]   ;;  %v3023_v41 = vld [vmem:[%s4995_s3 + $0x1e8] ss:$24 sps:$4 sm:$0xff]   ;;  %v3050_v52 = vld [vmem:[%s4995_s3 + $0x2d4] ss:$24 sps:$4 sm:$0xff]   ;;  %p3352_p3 = por %p3351_p2, %p3350_p1 }
  0x35   : > { %579 = vmatprep.subr.bf16.mxu0 %v2936_v21  ;;  %v346_v21 = vld [vmem:[%s3562_s15 + $0x78] sm:$0xff]  ;;  %v3052_v53 = vld [vmem:[%s4995_s3 + $0x2d0] ss:$24 sps:$4 sm:$0xff]   ;;  %v3058_v56 = vld [vmem:[%s4995_s3 + $0x14] ss:$24 sps:$4 sm:$0xff]  }
  0x36   : > { %1281 = vmatpush1.bf16.msra.mxu1 %v2998_v43  ;;  %v354_v27 = vpack.c.bf16 %v346_v21, %v344_v20  ;;  %v3017_v39 = vld [vmem:[%s4995_s3 + $0x1b8] ss:$24 sps:$4 sm:$0xff]   ;;  %v3055_v54 = vld [vmem:[%s4995_s3 + $0x2dc] ss:$24 sps:$4 sm:$0xff]   ;;  %p3353_p5 = pnand %p3352_p3, %p3346_p0 }
  0x37   : > { %1282 = vmatprep.subr.bf16.mxu1 %v3002_v45  ;;  %v3029_v43 = vld [vmem:[%s4995_s3 + $0x218] ss:$24 sps:$4 sm:$0xff]   ;;  %v3035_v45 = vld [vmem:[%s4995_s3 + $0x248] ss:$24 sps:$4 sm:$0xff]   ;;  %v3061_v6 = vld [vmem:[%s4995_s3 + $0x44] ss:$24 sps:$4 sm:$0xff]  }
  0x38   : > { %580 = vmatpush1.bf16.msra.mxu0 %v2938_v24  ;;  %v2987_v24 = vld [vmem:[%s4995_s3 + $0xc8] ss:$24 sps:$4 sm:$0xff]   ;;  %v3073_v7 = vld [vmem:[%s4997_s5 + $0x14] ss:$8 sps:$4 sm:$0xff]  }
  0x39   : > { %581 = vmatprep.subr.bf16.mxu0 %v2939_v25  ;;  %v351_v25 = vpack.c.bf16 %v341_v17, %v339_v16  ;;  %v3064_v17 = vld [vmem:[%s4995_s3 + $0x74] ss:$24 sps:$4 sm:$0xff]  }
  0x3a   : > { %1283 = vmatpush1.bf16.msra.mxu1 %v3004_v47  ;;  %v3041_v47 = vld [vmem:[%s4995_s3 + $0x278] ss:$24 sps:$4 sm:$0xff]  }
  0x3b   : > { %1284 = vmatprep.subr.bf16.mxu1 %v3008_v49  ;;  %v3046_v49 = vld [vmem:[%s4995_s3 + $0x2a0] ss:$24 sps:$4 sm:$0xff]  }
  0x3c   : > { %582 = vmatpush1.bf16.msra.mxu0 %v2941_v28  ;;  %v343_v28 = vld [vmem:[%s3562_s15 + $0x60] sm:$0xff] }
  0x3d   : > { %583 = vmatprep.subr.bf16.mxu0 %v2942_v30  ;;  %v2993_v30 = vld [vmem:[%s4995_s3 + $0xf8] ss:$24 sps:$4 sm:$0xff]   ;;  %v353_v33 = vpack.c.bf16 %v345_v29, %v343_v28 }
  0x3e   : > { %1285 = vmatpush1.bf16.msra.mxu1 %v3010_v55  ;;  %v3053_v55 = vld [vmem:[%s4995_s3 + $0x2d8] ss:$24 sps:$4 sm:$0xff]  }
  0x3f   : > { %1286 = vmatprep.subr.bf16.mxu1 %v3014_v57  ;;  %v3067_v57 = vld [vmem:[%s4997_s5 + $0x4] ss:$8 sps:$4 sm:$0xff]  }
  0x40   : > { %584 = vmatpush1.bf16.msra.mxu0 %v2944_v32  ;;  %v2999_v32 = vld [vmem:[%s4995_s3 + $0x128] ss:$24 sps:$4 sm:$0xff]  }
  0x41   : > { %585 = vmatprep.subr.bf16.mxu0 %v2945_v34  ;;  %v3007_v34 = vld [vmem:[%s4995_s3 + $0x15c] ss:$24 sps:$4 sm:$0xff]  }
  0x42   : > { %1287 = vmatpush1.bf16.msra.mxu1 %v3016_v61 }
  0x43   : > { %1288 = vmatprep.subr.bf16.mxu1 %v3020_v0 }
  0x44   : > { %586 = vmatpush1.bf16.msra.mxu0 %v2947_v36  ;;  %v3013_v36 = vld [vmem:[%s4995_s3 + $0x18c] ss:$24 sps:$4 sm:$0xff]  }
  0x45   : > { %587 = vmatprep.subr.bf16.mxu0 %v2948_v38  ;;  %v3019_v38 = vld [vmem:[%s4995_s3 + $0x1bc] ss:$24 sps:$4 sm:$0xff]  }
  0x46   : > { %1289 = vmatpush1.bf16.msra.mxu1 %v3022_v1 }
  0x47   : > { %1290 = vmatprep.subr.bf16.mxu1 %v3026_v5  ;;  %v3065_v5 = vld [vmem:[%s4997_s5] ss:$8 sps:$4 sm:$0xff]  }
  0x48   : > { %588 = vmatpush1.bf16.msra.mxu0 %v2950_v40  ;;  %v3025_v40 = vld [vmem:[%s4995_s3 + $0x1ec] ss:$24 sps:$4 sm:$0xff]  }
  0x49   : > { %589 = vmatprep.subr.bf16.mxu0 %v2951_v42  ;;  %v3031_v42 = vld [vmem:[%s4995_s3 + $0x21c] ss:$24 sps:$4 sm:$0xff]  }
  0x4a   : > { %1291 = vmatpush1.bf16.msra.mxu1 %v3028_v9 }
  0x4b   : > { %1292 = vmatprep.subr.bf16.mxu1 %v3032_v13  ;;  %v3059_v13 = vld [vmem:[%s4995_s3 + $0x40] ss:$24 sps:$4 sm:$0xff]  }
  0x4c   : > { %590 = vmatpush1.bf16.msra.mxu0 %v2953_v44  ;;  %v3037_v44 = vld [vmem:[%s4995_s3 + $0x24c] ss:$24 sps:$4 sm:$0xff]  }
  0x4d   : > { %591 = vmatprep.subr.bf16.mxu0 %v2954_v46  ;;  %v3043_v46 = vld [vmem:[%s4995_s3 + $0x27c] ss:$24 sps:$4 sm:$0xff]  }
  0x4e   : > { %1293 = vmatpush1.bf16.msra.mxu1 %v3034_v15 }
  0x4f   : > { %1294 = vmatprep.subr.bf16.mxu1 %v3038_v19 }
  0x50   : > { %592 = vmatpush1.bf16.msra.mxu0 %v2956_v48  ;;  %v3044_v48 = vld [vmem:[%s4995_s3 + $0x2a4] ss:$24 sps:$4 sm:$0xff]  }
  0x51   : > { %593 = vmatprep.subr.bf16.mxu0 %v2957_v50  ;;  %v3049_v50 = vld [vmem:[%s4995_s3 + $0x2ac] ss:$24 sps:$4 sm:$0xff]  }
  0x52   : > { %1295 = vmatpush1.bf16.msra.mxu1 %v3040_v23  ;;  %v3077_v23 = vld [vmem:[%s4997_s5 + $0x20] ss:$8 sps:$4 sm:$0xff]  }
  0x53   : > { %1296 = vmatprep.subr.bf16.mxu1 %v3044_v48 }
  0x54   : > { %594 = vmatpush1.bf16.msra.mxu0 %v2959_v51  ;;  %v3047_v51 = vld [vmem:[%s4995_s3 + $0x2a8] ss:$24 sps:$4 sm:$0xff]  }
  0x55   : > { %1341 = vmatprep.subr.bf16.mxu0 %v2965_v58 }
  0x56   : > { %1297 = vmatpush1.bf16.msra.mxu1 %v3046_v49  ;;  %v3080_v49 = vld [vmem:[%s4995_s3 + $0x100] ss:$24 sps:$4 sm:$0xff]  }
  0x57   : > { %596 = vmatmul.mubr.bf16.vlgmr.msra.gmra.mrb[0].mxu0 %v347_v59  ;;  %1298 = vmatprep.subr.bf16.mxu1 %v3050_v52 }
  0x58   : > { %605 = vmatprep.mubr.bf16.mxu0 %v350_v62  ;;  %1342 = vmatpush1.bf16.msra.mxu0 %v2963_v60 }
  0x59   : > { %1343 = vmatprep.subr.bf16.mxu0 %v2971_v63 }
  0x5a   : > { %1299 = vmatpush1.bf16.msra.mxu1 %v3052_v53  ;;  %v3088_v53 = vld [vmem:[%s4995_s3 + $0x134] ss:$24 sps:$4 sm:$0xff]  }
  0x5b   : > { %1414 = vmatprep.subr.bf16.mxu1 %v3058_v56 }
  0x5c   : > { %1344 = vmatpush1.bf16.msra.mxu0 %v2969_v4  ;;  %v3056_v4 = vld [vmem:[%s4995_s3 + $0x10] ss:$24 sps:$4 sm:$0xff]  }
  0x5d   : > { %1345 = vmatprep.subr.bf16.mxu0 %v2977_v8 }
  0x5f   : > { %606 = vmatmul.mubr.bf16.gmra.mrb[4].mxu0 %v349_v11 }
  0x60   : > { %615 = vmatprep.mubr.bf16.mxu0 %v352_v14  ;;  %1346 = vmatpush1.bf16.msra.mxu0 %v2975_v10  ;;  %v3071_v14 = vld [vmem:[%s4997_s5 + $0x10] ss:$8 sps:$4 sm:$0xff]  }
  0x61   : > { %1347 = vmatprep.subr.bf16.mxu0 %v2983_v12 }
  0x64   : > { %1348 = vmatpush1.bf16.msra.mxu0 %v2981_v18  ;;  %v3079_v18 = vld [vmem:[%s4997_s5 + $0x24] ss:$8 sps:$4 sm:$0xff]  }
  0x65   : > { %1349 = vmatprep.subr.bf16.mxu0 %v2989_v22  ;;  %v3062_v22 = vld [vmem:[%s4995_s3 + $0x70] ss:$24 sps:$4 sm:$0xff]  }
  0x67   : > { %616 = vmatmul.mubr.bf16.gmra.mrb[8].mxu0 %v351_v25  ;;  %v3085_v25 = vld [vmem:[%s4997_s5 + $0x34] ss:$8 sps:$4 sm:$0xff]  }
  0x68   : > { %625 = vmatprep.mubr.bf16.mxu0 %v354_v27  ;;  %1350 = vmatpush1.bf16.msra.mxu0 %v2987_v24  ;;  %v3070_v24 = vld [vmem:[%s4995_s3 + $0xa4] ss:$24 sps:$4 sm:$0xff]  }
  0x69   : > { %1351 = vmatprep.subr.bf16.mxu0 %v2995_v26 }
  0x6c   : > { %1352 = vmatpush1.bf16.msra.mxu0 %v2993_v30 }
  0x6d   : > { %1353 = vmatprep.subr.bf16.mxu0 %v3001_v31  ;;  %v3068_v31 = vld [vmem:[%s4995_s3 + $0xa0] ss:$24 sps:$4 sm:$0xff]  }
  0x6f   : > { %626 = vmatmul.mubr.bf16.gmra.mrb[12].mxu0 %v353_v33 }
  0x70   : > { %1354 = vmatpush1.bf16.msra.mxu0 %v2999_v32  ;;  %v3083_v32 = vld [vmem:[%s4997_s5 + $0x30] ss:$8 sps:$4 sm:$0xff]  }
  0x71   : > { %1355 = vmatprep.subr.bf16.mxu0 %v3007_v34 }
  0x74   : > { %1356 = vmatpush1.bf16.msra.mxu0 %v3005_v35  ;;  %v3076_v35 = vld [vmem:[%s4995_s3 + $0xd4] ss:$24 sps:$4 sm:$0xff]  }
  0x75   : > { %1357 = vmatprep.subr.bf16.mxu0 %v3013_v36  ;;  %v3091_v36 = vld [vmem:[%s4997_s5 + $0x44] ss:$8 sps:$4 sm:$0xff]  }
  0x78   : > { %1358 = vmatpush1.bf16.msra.mxu0 %v3011_v37 }
  0x79   : > { %1359 = vmatprep.subr.bf16.mxu0 %v3019_v38 }
  0x7c   : > { %1360 = vmatpush1.bf16.msra.mxu0 %v3017_v39 }
  0x7d   : > { %1361 = vmatprep.subr.bf16.mxu0 %v3025_v40  ;;  %v3074_v40 = vld [vmem:[%s4995_s3 + $0xd0] ss:$24 sps:$4 sm:$0xff]  }
  0x80   : > { %1362 = vmatpush1.bf16.msra.mxu0 %v3023_v41  ;;  %v3089_v41 = vld [vmem:[%s4997_s5 + $0x40] ss:$8 sps:$4 sm:$0xff]  }
  0x81   : > { %1363 = vmatprep.subr.bf16.mxu0 %v3031_v42  ;;  %v3082_v42 = vld [vmem:[%s4995_s3 + $0x104] ss:$24 sps:$4 sm:$0xff]  }
  0x84   : > { %1364 = vmatpush1.bf16.msra.mxu0 %v3029_v43  ;;  %v3097_v43 = vld [vmem:[%s4997_s5 + $0x54] ss:$8 sps:$4 sm:$0xff]  }
  0x85   : > { %1365 = vmatprep.subr.bf16.mxu0 %v3037_v44 }
  0x88   : > { %1366 = vmatpush1.bf16.msra.mxu0 %v3035_v45 }
  0x89   : > { %1367 = vmatprep.subr.bf16.mxu0 %v3043_v46 }
  0x8c   : > { %1368 = vmatpush1.bf16.msra.mxu0 %v3041_v47 }
  0x8d   : > { %1369 = vmatprep.subr.bf16.mxu0 %v3049_v50  ;;  %v3095_v50 = vld [vmem:[%s4997_s5 + $0x50] ss:$8 sps:$4 sm:$0xff]  }
  0x90   : > { %1370 = vmatpush1.bf16.msra.mxu0 %v3047_v51 }
  0x91   : > { %1371 = vmatprep.subr.bf16.mxu0 %v3055_v54  ;;  %v3103_v54 = vld [vmem:[%s4997_s5 + $0x64] ss:$8 sps:$4 sm:$0xff]  }
  0x94   : > { %1372 = vmatpush1.bf16.msra.mxu0 %v3053_v55 }
  0x95   : > { %1729 = vmatprep.subr.bf16.mxu0 %v3067_v57 }
 0x12a   : > { %v597_v58 = vpop.f32.mrb[0].mxu0 }
 0x12b   : > { %v599_v59 = vpop.f32.mrb[1].mxu0  ;;  %v636_v61 = vmax.f32 %v597_v58, 0.0  ;;  %v3086_v58 = vld [vmem:[%s4995_s3 + $0x130] ss:$24 sps:$4 sm:$0xff]  }
 0x12c   : > { %v601_v60 = vpop.f32.mrb[2].mxu0  ;;  %v637_v0 = vmax.f32 %v599_v59, 0.0  ;;  %v3094_v59 = vld [vmem:[%s4995_s3 + $0x164] ss:$24 sps:$4 sm:$0xff]  }
 0x12d   : > { %v638_v62 = vmax.f32 %v601_v60, 0.0  ;;  %v603_v63 = vpop.f32.mrb[3].mxu0  ;;  %v3101_v60 = vld [vmem:[%s4997_s5 + $0x60] ss:$8 sps:$4 sm:$0xff]  }
 0x12e   : > { %v639_v1 = vmax.f32 %v603_v63, 0.0  ;;  %v3092_v63 = vld [vmem:[%s4995_s3 + $0x160] ss:$24 sps:$4 sm:$0xff]  }
 0x12f   : > { %v3847_v2 = vpack.c.bf16 %v638_v62, %v636_v61  ;;  %v3109_v61 = vld [vmem:[%s4997_s5 + $0x74] ss:$8 sps:$4 sm:$0xff]   ;;  %v3154_v62 = vld [vmem:[%s3845_s30 + $0x4] ss:$8 sps:$4 sm:$0xff]  }
 0x130   : > { %v3849_v3 = vpack.c.bf16 %v639_v1, %v637_v0  ;;  %v3100_v0 = vld [vmem:[%s4995_s3 + $0x194] ss:$24 sps:$4 sm:$0xff]   ;;  %v3107_v1 = vld [vmem:[%s4997_s5 + $0x70] ss:$8 sps:$4 sm:$0xff]  }
 0x132   : > { %v607_v8 = vpop.f32.mrb[4].mxu0  ;;  %1300 = vmatprep.mubr.bf16.mxu1 %v3849_v3  ;;  %1373 = vmatprep.mubr.bf16.mxu0 %v3849_v3 }
 0x133   : > { %v640_v9 = vmax.f32 %v607_v8, 0.0  ;;  %v609_v10 = vpop.f32.mrb[5].mxu0  ;;  %1301 = vmatmul.mubr.bf16.vlgmr.msra.gmra.mrb[0].mxu1 %v3847_v2  ;;  %1374 = vmatmul.mubr.bf16.vlgmr.msra.gmra.mrb[16].mxu0 %v3847_v2  ;;  %v3104_v8 = vld [vmem:[%s4995_s3 + $0x1c0] ss:$24 sps:$4 sm:$0xff]  }
 0x134   : > { %v641_v11 = vmax.f32 %v609_v10, 0.0  ;;  %1415 = vmatpush1.bf16.msra.mxu1 %v3056_v4  ;;  %v611_v12 = vpop.f32.mrb[6].mxu0  ;;  %1730 = vmatpush1.bf16.msra.mxu0 %v3065_v5  ;;  %v3115_v4 = vld [vmem:[%s4997_s5 + $0x84] ss:$8 sps:$4 sm:$0xff]   ;;  %v3119_v10 = vld [vmem:[%s4997_s5 + $0x90] ss:$8 sps:$4 sm:$0xff]  }
 0x135   : > { %v642_v15 = vmax.f32 %v611_v12, 0.0  ;;  %v613_v16 = vpop.f32.mrb[7].mxu0  ;;  %1416 = vmatprep.subr.bf16.mxu1 %v3061_v6  ;;  %1731 = vmatprep.subr.bf16.mxu0 %v3073_v7  ;;  %v3106_v5 = vld [vmem:[%s4995_s3 + $0x1c4] ss:$24 sps:$4 sm:$0xff]   ;;  %v3113_v6 = vld [vmem:[%s4997_s5 + $0x80] ss:$8 sps:$4 sm:$0xff]  }
 0x136   : > { %v643_v19 = vmax.f32 %v613_v16, 0.0  ;;  %v3121_v7 = vld [vmem:[%s4997_s5 + $0x94] ss:$8 sps:$4 sm:$0xff]   ;;  %v3110_v12 = vld [vmem:[%s4995_s3 + $0x1f0] ss:$24 sps:$4 sm:$0xff]  }
 0x137   : > { %v3879_v20 = vpack.c.bf16 %v642_v15, %v640_v9  ;;  %v3112_v9 = vld [vmem:[%s4995_s3 + $0x1f4] ss:$24 sps:$4 sm:$0xff]   ;;  %v3116_v16 = vld [vmem:[%s4995_s3 + $0x220] ss:$24 sps:$4 sm:$0xff]  }
 0x138   : > { %v3881_v21 = vpack.c.bf16 %v643_v19, %v641_v11  ;;  %1417 = vmatpush1.bf16.msra.mxu1 %v3059_v13  ;;  %1732 = vmatpush1.bf16.msra.mxu0 %v3071_v14  ;;  %v3127_v11 = vld [vmem:[%s4997_s5 + $0xa4] ss:$8 sps:$4 sm:$0xff]   ;;  %v3125_v14 = vld [vmem:[%s4997_s5 + $0xa0] ss:$8 sps:$4 sm:$0xff]   ;;  %v3133_v15 = vld [vmem:[%s4997_s5 + $0xb4] ss:$8 sps:$4 sm:$0xff]  }
 0x139   : > { %1418 = vmatprep.subr.bf16.mxu1 %v3064_v17  ;;  %1733 = vmatprep.subr.bf16.mxu0 %v3079_v18  ;;  %v3118_v13 = vld [vmem:[%s4995_s3 + $0x224] ss:$24 sps:$4 sm:$0xff]   ;;  %v3124_v17 = vld [vmem:[%s4995_s3 + $0x254] ss:$24 sps:$4 sm:$0xff]   ;;  %v3131_v18 = vld [vmem:[%s4997_s5 + $0xb0] ss:$8 sps:$4 sm:$0xff]  }
 0x13a   : > { %v617_v26 = vpop.f32.mrb[8].mxu0  ;;  %1310 = vmatprep.mubr.bf16.mxu1 %v3881_v21  ;;  %1383 = vmatprep.mubr.bf16.mxu0 %v3881_v21  ;;  %v3139_v19 = vld [vmem:[%s4997_s5 + $0xc4] ss:$8 sps:$4 sm:$0xff]  }
 0x13b   : > { %v644_v27 = vmax.f32 %v617_v26, 0.0  ;;  %v619_v28 = vpop.f32.mrb[9].mxu0  ;;  %1311 = vmatmul.mubr.bf16.gmra.mrb[4].mxu1 %v3879_v20  ;;  %1384 = vmatmul.mubr.bf16.gmra.mrb[20].mxu0 %v3879_v20  ;;  %v3128_v26 = vld [vmem:[%s4995_s3 + $0x280] ss:$24 sps:$4 sm:$0xff]  }
 0x13c   : > { %v645_v29 = vmax.f32 %v619_v28, 0.0  ;;  %1419 = vmatpush1.bf16.msra.mxu1 %v3062_v22  ;;  %v621_v30 = vpop.f32.mrb[10].mxu0  ;;  %1734 = vmatpush1.bf16.msra.mxu0 %v3077_v23  ;;  %v3122_v22 = vld [vmem:[%s4995_s3 + $0x250] ss:$24 sps:$4 sm:$0xff]   ;;  %v3130_v23 = vld [vmem:[%s4995_s3 + $0x284] ss:$24 sps:$4 sm:$0xff]  }
 0x13d   : > { %v646_v33 = vmax.f32 %v621_v30, 0.0  ;;  %v623_v34 = vpop.f32.mrb[11].mxu0  ;;  %1420 = vmatprep.subr.bf16.mxu1 %v3070_v24  ;;  %1735 = vmatprep.subr.bf16.mxu0 %v3085_v25  ;;  %v3137_v24 = vld [vmem:[%s4997_s5 + $0xc0] ss:$8 sps:$4 sm:$0xff]   ;;  %v3145_v25 = vld [vmem:[%s4997_s5 + $0xd4] ss:$8 sps:$4 sm:$0xff]  }
 0x13e   : > { %v647_v37 = vmax.f32 %v623_v34, 0.0  ;;  %v3143_v28 = vld [vmem:[%s4997_s5 + $0xd0] ss:$8 sps:$4 sm:$0xff]  }
 0x13f   : > { %v3911_v38 = vpack.c.bf16 %v646_v33, %v644_v27  ;;  %v3136_v27 = vld [vmem:[%s4995_s3 + $0x2b4] ss:$24 sps:$4 sm:$0xff]   ;;  %v3134_v30 = vld [vmem:[%s4995_s3 + $0x2b0] ss:$24 sps:$4 sm:$0xff]   ;;  %v3140_v34 = vld [vmem:[%s4995_s3 + $0x2e0] ss:$24 sps:$4 sm:$0xff]  }
 0x140   : > { %v3913_v39 = vpack.c.bf16 %v647_v37, %v645_v29  ;;  %1421 = vmatpush1.bf16.msra.mxu1 %v3068_v31  ;;  %1736 = vmatpush1.bf16.msra.mxu0 %v3083_v32  ;;  %v3148_v29 = vld [vmem:[%s4997_s5 + $0xe4] ss:$8 sps:$4 sm:$0xff]   ;;  %v3146_v32 = vld [vmem:[%s4997_s5 + $0xe0] ss:$8 sps:$4 sm:$0xff]   ;;  %v3151_v33 = vld [vmem:[%s4997_s5 + $0xf4] ss:$8 sps:$4 sm:$0xff]  }
 0x141   : > { %1422 = vmatprep.subr.bf16.mxu1 %v3076_v35  ;;  %1737 = vmatprep.subr.bf16.mxu0 %v3091_v36  ;;  %v3142_v31 = vld [vmem:[%s4995_s3 + $0x2e4] ss:$24 sps:$4 sm:$0xff]   ;;  %v3149_v35 = vld [vmem:[%s4997_s5 + $0xf0] ss:$8 sps:$4 sm:$0xff]   ;;  %v3152_v36 = vld [vmem:[%s3845_s30] ss:$8 sps:$4 sm:$0xff]  }
 0x142   : > { %v627_v44 = vpop.f32.mrb[12].mxu0  ;;  %1320 = vmatprep.mubr.bf16.mxu1 %v3913_v39  ;;  %1393 = vmatprep.mubr.bf16.mxu0 %v3913_v39  ;;  %v3155_v37 = vld [vmem:[%s3845_s30 + $0x14] ss:$8 sps:$4 sm:$0xff]  }
 0x143   : > { %v648_v45 = vmax.f32 %v627_v44, 0.0  ;;  %v629_v46 = vpop.f32.mrb[13].mxu0  ;;  %1321 = vmatmul.mubr.bf16.gmra.mrb[8].mxu1 %v3911_v38  ;;  %1394 = vmatmul.mubr.bf16.gmra.mrb[24].mxu0 %v3911_v38  ;;  %v3166_v44 = vld [vmem:[%s3845_s30 + $0x40] ss:$8 sps:$4 sm:$0xff]  }
 0x144   : > { %v649_v47 = vmax.f32 %v629_v46, 0.0  ;;  %1423 = vmatpush1.bf16.msra.mxu1 %v3074_v40  ;;  %v631_v48 = vpop.f32.mrb[14].mxu0  ;;  %1738 = vmatpush1.bf16.msra.mxu0 %v3089_v41  ;;  %v3157_v40 = vld [vmem:[%s3845_s30 + $0x10] ss:$8 sps:$4 sm:$0xff]   ;;  %v3158_v41 = vld [vmem:[%s3845_s30 + $0x24] ss:$8 sps:$4 sm:$0xff]  }
 0x145   : > { %v650_v51 = vmax.f32 %v631_v48, 0.0  ;;  %v633_v52 = vpop.f32.mrb[15].mxu0  ;;  %1424 = vmatprep.subr.bf16.mxu1 %v3082_v42  ;;  %1739 = vmatprep.subr.bf16.mxu0 %v3097_v43  ;;  %v3160_v42 = vld [vmem:[%s3845_s30 + $0x20] ss:$8 sps:$4 sm:$0xff]   ;;  %v3161_v43 = vld [vmem:[%s3845_s30 + $0x34] ss:$8 sps:$4 sm:$0xff]  }
 0x146   : > { %v651_v55 = vmax.f32 %v633_v52, 0.0  ;;  %v3173_v46 = vld [vmem:[%s4998_s6 + $0x20] ss:$8 sps:$4 sm:$0xff]   ;;  %v3178_v48 = vld [vmem:[%s4998_s6 + $0x34] ss:$8 sps:$4 sm:$0xff]  }
 0x147   : > { %v3943_v56 = vpack.c.bf16 %v650_v51, %v648_v45  ;;  %v3170_v45 = vld [vmem:[%s4998_s6 + $0x10] ss:$8 sps:$4 sm:$0xff]   ;;  %v3179_v51 = vld [vmem:[%s4998_s6 + $0x40] ss:$8 sps:$4 sm:$0xff]   ;;  %v3184_v52 = vld [vmem:[%s4998_s6 + $0x54] ss:$8 sps:$4 sm:$0xff]  }
 0x148   : > { %v3945_v57 = vpack.c.bf16 %v651_v55, %v649_v47  ;;  %1425 = vmatpush1.bf16.msra.mxu1 %v3080_v49  ;;  %1740 = vmatpush1.bf16.msra.mxu0 %v3095_v50  ;;  %v3175_v47 = vld [vmem:[%s4998_s6 + $0x24] ss:$8 sps:$4 sm:$0xff]   ;;  %v3176_v49 = vld [vmem:[%s4998_s6 + $0x30] ss:$8 sps:$4 sm:$0xff]   ;;  %v3185_v55 = vld [vmem:[%s4998_s6 + $0x60] ss:$8 sps:$4 sm:$0xff]  }
 0x149   : > { %1426 = vmatprep.subr.bf16.mxu1 %v3088_v53  ;;  %1741 = vmatprep.subr.bf16.mxu0 %v3103_v54  ;;  %v3181_v50 = vld [vmem:[%s4998_s6 + $0x44] ss:$8 sps:$4 sm:$0xff]   ;;  %v3182_v53 = vld [vmem:[%s4998_s6 + $0x50] ss:$8 sps:$4 sm:$0xff]  }
 0x14a   : > { %1330 = vmatprep.mubr.bf16.mxu1 %v3945_v57  ;;  %1403 = vmatprep.mubr.bf16.mxu0 %v3945_v57  ;;  %v3187_v54 = vld [vmem:[%s4998_s6 + $0x64] ss:$8 sps:$4 sm:$0xff]  }
 0x14b   : > { %1331 = vmatmul.mubr.bf16.gmra.mrb[12].mxu1 %v3943_v56  ;;  %1404 = vmatmul.mubr.bf16.gmra.mrb[28].mxu0 %v3943_v56 }
 0x14c   : > { %1427 = vmatpush1.bf16.msra.mxu1 %v3086_v58  ;;  %1446 = vmatprep.mubr.bf16.mxu1 %v3849_v3  ;;  %v3098_v3 = vld [vmem:[%s4995_s3 + $0x190] ss:$24 sps:$4 sm:$0xff]   ;;  %v3193_v58 = vld [vmem:[%s4998_s6 + $0x84] ss:$8 sps:$4 sm:$0xff]  }
 0x14d   : > { %1428 = vmatprep.subr.bf16.mxu1 %v3094_v59  ;;  %1742 = vmatpush1.bf16.msra.mxu0 %v3101_v60  ;;  %v3191_v59 = vld [vmem:[%s4998_s6 + $0x80] ss:$8 sps:$4 sm:$0xff]   ;;  %v3196_v60 = vld [vmem:[%s4998_s6 + $0x94] ss:$8 sps:$4 sm:$0xff]  }
 0x14e   : > { %1743 = vmatprep.subr.bf16.mxu0 %v3109_v61  ;;  %1761 = vmatprep.mubr.bf16.mxu0 %v3154_v62  ;;  %v3194_v61 = vld [vmem:[%s4998_s6 + $0x90] ss:$8 sps:$4 sm:$0xff]   ;;  %v3199_v62 = vld [vmem:[%s4998_s6 + $0xa4] ss:$8 sps:$4 sm:$0xff]  }
 0x150   : > { %1429 = vmatpush1.bf16.msra.mxu1 %v3092_v63  ;;  %v3197_v63 = vld [vmem:[%s4998_s6 + $0xa0] ss:$8 sps:$4 sm:$0xff]  }
 0x151   : > { %1430 = vmatprep.subr.bf16.mxu1 %v3100_v0  ;;  %1744 = vmatpush1.bf16.msra.mxu0 %v3107_v1  ;;  %v3202_v0 = vld [vmem:[%s4998_s6 + $0xb4] ss:$8 sps:$4 sm:$0xff]   ;;  %v758_v1 = vlaneseq }
 0x152   : > { %1745 = vmatprep.subr.bf16.mxu0 %v3115_v4  ;;  %v3200_v4 = vld [vmem:[%s4998_s6 + $0xb0] ss:$8 sps:$4 sm:$0xff]  }
 0x154   : > { %1431 = vmatpush1.bf16.msra.mxu1 %v3098_v3  ;;  %v4155_v3 = vshrl.u32 %v758_v1, 7 }
 0x155   : > { %1432 = vmatprep.subr.bf16.mxu1 %v3106_v5  ;;  %1746 = vmatpush1.bf16.msra.mxu0 %v3113_v6 }
 0x156   : > { %1747 = vmatprep.subr.bf16.mxu0 %v3121_v7  ;;  %v760_v5 = vsub.s32 0, %v4155_v3  ;;  %v768_v6 = vsub.s32 2, %v4155_v3  ;;  %v4162_v7 = vld [vmem:[%s4996_s4] sm:$0x3f]  ;;  %vm2022_vm0 = vcmp.lt.s32.totalorder %v4155_v3, 7  ;;  %vm2153_vm1 = vcmp.lt.s32.totalorder %v4155_v3, 6 }
 0x158   : > { %1433 = vmatpush1.bf16.msra.mxu1 %v3104_v8  ;;  %v764_v8 = vsub.s32 1, %v4155_v3 }
 0x159   : > { %1434 = vmatprep.subr.bf16.mxu1 %v3112_v9  ;;  %1748 = vmatpush1.bf16.msra.mxu0 %v3119_v10  ;;  %v772_v9 = vsub.s32 3, %v4155_v3  ;;  %v4167_v10 = vrot.slane %v4162_v7, %v760_v5 }
 0x15a   : > { %1749 = vmatprep.subr.bf16.mxu0 %v3127_v11  ;;  %v4170_v11 = vrot.slane %v4162_v7, %v768_v6 }
 0x15c   : > { %1435 = vmatpush1.bf16.msra.mxu1 %v3110_v12  ;;  %v4173_v12 = vrot.slane %v4162_v7, %v764_v8 }
 0x15d   : > { %1436 = vmatprep.subr.bf16.mxu1 %v3118_v13  ;;  %1750 = vmatpush1.bf16.msra.mxu0 %v3125_v14  ;;  %v4176_v13 = vrot.slane %v4162_v7, %v772_v9 }
 0x15e   : > { %1751 = vmatprep.subr.bf16.mxu0 %v3133_v15 }
 0x160   : > { %1437 = vmatpush1.bf16.msra.mxu1 %v3116_v16 }
 0x161   : > { %1438 = vmatprep.subr.bf16.mxu1 %v3124_v17  ;;  %1752 = vmatpush1.bf16.msra.mxu0 %v3131_v18 }
 0x162   : > { %1753 = vmatprep.subr.bf16.mxu0 %v3139_v19 }
 0x164   : > { %1439 = vmatpush1.bf16.msra.mxu1 %v3122_v22  ;;  %v3205_v22 = vld [vmem:[%s4998_s6 + $0xc4] ss:$8 sps:$4 sm:$0xff]  }
 0x165   : > { %1440 = vmatprep.subr.bf16.mxu1 %v3130_v23  ;;  %1754 = vmatpush1.bf16.msra.mxu0 %v3137_v24 }
 0x166   : > { %1755 = vmatprep.subr.bf16.mxu0 %v3145_v25 }
 0x168   : > { %1441 = vmatpush1.bf16.msra.mxu1 %v3128_v26 }
 0x169   : > { %1442 = vmatprep.subr.bf16.mxu1 %v3136_v27  ;;  %1756 = vmatpush1.bf16.msra.mxu0 %v3143_v28  ;;  %v3203_v27 = vld [vmem:[%s4998_s6 + $0xc0] ss:$8 sps:$4 sm:$0xff]  }
 0x16a   : > { %1757 = vmatprep.subr.bf16.mxu0 %v3148_v29 }
 0x16c   : > { %1443 = vmatpush1.bf16.msra.mxu1 %v3134_v30 }
 0x16d   : > { %1444 = vmatprep.subr.bf16.mxu1 %v3142_v31  ;;  %1758 = vmatpush1.bf16.msra.mxu0 %v3146_v32 }
 0x16e   : > { %1759 = vmatprep.subr.bf16.mxu0 %v3151_v33 }
 0x170   : > { %1445 = vmatpush1.bf16.msra.mxu1 %v3140_v34 }
 0x171   : > { %1760 = vmatpush1.bf16.msra.mxu0 %v3149_v35 }
 0x173   : > { %1447 = vmatmul.mubr.bf16.vlgmr.msra.gmra.mrb[16].mxu1 %v3847_v2  ;;  %v3163_v2 = vld [vmem:[%s3845_s30 + $0x30] ss:$8 sps:$4 sm:$0xff]  }
 0x174   : > { %1456 = vmatprep.mubr.bf16.mxu1 %v3881_v21  ;;  %1762 = vmatmul.mubr.bf16.vlgmr.msra.gmra.mrb[32].mxu0 %v3152_v36  ;;  %v3164_v21 = vld [vmem:[%s3845_s30 + $0x44] ss:$8 sps:$4 sm:$0xff]   ;;  %s4937_s30 = scalar_lea.hbm %s4999_s7, %s2853_s21 }
 0x175   : > { %1771 = vmatprep.mubr.bf16.mxu0 %v3155_v37  ;;  %v3208_v37 = vld [vmem:[%s4998_s6 + $0xd4] ss:$8 sps:$4 sm:$0xff]  }
 0x17b   : > { %1457 = vmatmul.mubr.bf16.gmra.mrb[20].mxu1 %v3879_v20  ;;  %v3167_v20 = vld [vmem:[%s4998_s6] ss:$8 sps:$4 sm:$0xff]  }
 0x17c   : > { %1466 = vmatprep.mubr.bf16.mxu1 %v3913_v39  ;;  %1772 = vmatmul.mubr.bf16.gmra.mrb[36].mxu0 %v3157_v40  ;;  %v3172_v39 = vld [vmem:[%s4998_s6 + $0x14] ss:$8 sps:$4 sm:$0xff]  }
 0x17d   : > { %1781 = vmatprep.mubr.bf16.mxu0 %v3158_v41  ;;  %v3206_v41 = vld [vmem:[%s4998_s6 + $0xd0] ss:$8 sps:$4 sm:$0xff]  }
 0x183   : > { %1467 = vmatmul.mubr.bf16.gmra.mrb[24].mxu1 %v3911_v38  ;;  %v3169_v38 = vld [vmem:[%s4998_s6 + $0x4] ss:$8 sps:$4 sm:$0xff]  }
 0x184   : > { %1476 = vmatprep.mubr.bf16.mxu1 %v3945_v57  ;;  %1782 = vmatmul.mubr.bf16.gmra.mrb[40].mxu0 %v3160_v42  ;;  %v3188_v57 = vld [vmem:[%s4998_s6 + $0x70] ss:$8 sps:$4 sm:$0xff]  }
 0x185   : > { %1791 = vmatprep.mubr.bf16.mxu0 %v3161_v43  ;;  %2434 = vmatprep.subr.bf16.mxu1 %v3169_v38 }
 0x186   : > { %2435 = vmatpush1.bf16.msra.mxu1 %v3167_v20 }
 0x187   : > { %2436 = vmatprep.subr.bf16.mxu1 %v3172_v39 }
 0x18a   : > { %2437 = vmatpush1.bf16.msra.mxu1 %v3170_v45 }
 0x18b   : > { %1477 = vmatmul.mubr.bf16.gmra.mrb[28].mxu1 %v3943_v56  ;;  %2438 = vmatprep.subr.bf16.mxu1 %v3175_v47  ;;  %v3190_v56 = vld [vmem:[%s4998_s6 + $0x74] ss:$8 sps:$4 sm:$0xff]  }
 0x18c   : > { %1792 = vmatmul.mubr.bf16.gmra.mrb[44].mxu0 %v3163_v2 }
 0x18d   : > { %1801 = vmatprep.mubr.bf16.mxu0 %v3164_v21 }
 0x18e   : > { %2439 = vmatpush1.bf16.msra.mxu1 %v3173_v46 }
 0x18f   : > { %2440 = vmatprep.subr.bf16.mxu1 %v3178_v48 }
 0x192   : > { %2441 = vmatpush1.bf16.msra.mxu1 %v3176_v49 }
 0x193   : > { %2442 = vmatprep.subr.bf16.mxu1 %v3181_v50 }
 0x194   : > { %1802 = vmatmul.mubr.bf16.gmra.mrb[48].mxu0 %v3166_v44 }
 0x196   : > { %2443 = vmatpush1.bf16.msra.mxu1 %v3179_v51 }
 0x197   : > { %2444 = vmatprep.subr.bf16.mxu1 %v3184_v52  ;;  %v3211_v52 = vld [vmem:[%s4998_s6 + $0xe4] ss:$8 sps:$4 sm:$0xff]  }
 0x19a   : > { %2445 = vmatpush1.bf16.msra.mxu1 %v3182_v53 }
 0x19b   : > { %2446 = vmatprep.subr.bf16.mxu1 %v3187_v54 }
 0x19e   : > { %2447 = vmatpush1.bf16.msra.mxu1 %v3185_v55 }
 0x19f   : > { %2448 = vmatprep.subr.bf16.mxu1 %v3190_v56  ;;  %v3209_v56 = vld [vmem:[%s4998_s6 + $0xe0] ss:$8 sps:$4 sm:$0xff]  }
 0x1a2   : > { %2449 = vmatpush1.bf16.msra.mxu1 %v3188_v57 }
 0x1a3   : > { %2450 = vmatprep.subr.bf16.mxu1 %v3193_v58 }
 0x1a6   : > { %2451 = vmatpush1.bf16.msra.mxu1 %v3191_v59  ;;  %v3214_v59 = vld [vmem:[%s4998_s6 + $0xf4] ss:$8 sps:$4 sm:$0xff]  }
 0x1a7   : > { %2452 = vmatprep.subr.bf16.mxu1 %v3196_v60 }
 0x1aa   : > { %2453 = vmatpush1.bf16.msra.mxu1 %v3194_v61 }
 0x1ab   : > { %2454 = vmatprep.subr.bf16.mxu1 %v3199_v62  ;;  %v3212_v62 = vld [vmem:[%s4998_s6 + $0xf0] ss:$8 sps:$4 sm:$0xff]  }
 0x1ae   : > { %2455 = vmatpush1.bf16.msra.mxu1 %v3197_v63 }
 0x1af   : > { %2456 = vmatprep.subr.bf16.mxu1 %v3202_v0 }
 0x1b2   : > { %2457 = vmatpush1.bf16.msra.mxu1 %v3200_v4 }
 0x1b3   : > { %2458 = vmatprep.subr.bf16.mxu1 %v3205_v22 }
 0x1b6   : > { %2459 = vmatpush1.bf16.msra.mxu1 %v3203_v27 }
 0x1b7   : > { %2460 = vmatprep.subr.bf16.mxu1 %v3208_v37 }
 0x1ba   : > { %2461 = vmatpush1.bf16.msra.mxu1 %v3206_v41 }
 0x1bb   : > { %2462 = vmatprep.subr.bf16.mxu1 %v3211_v52 }
 0x1be   : > { %2463 = vmatpush1.bf16.msra.mxu1 %v3209_v56 }
 0x1bf   : > { %2464 = vmatprep.subr.bf16.mxu1 %v3214_v59 }
 0x1c2   : > { %2465 = vmatpush1.bf16.msra.mxu1 %v3212_v62 }
 0x206   : > { %v1302_v14 = vpop.f32.mrb[0].mxu1  ;;  %v1375_v15 = vpop.f32.mrb[16].mxu0 }
 0x207   : > { %v4179_v16 = vadd.f32 %v1302_v14, %v4167_v10  ;;  %v4182_v17 = vadd.f32 %v1375_v15, %v4170_v11  ;;  %v1304_v18 = vpop.f32.mrb[1].mxu1  ;;  %v1377_v19 = vpop.f32.mrb[17].mxu0 }
 0x208   : > { %v4188_v23 = vadd.f32 %v1304_v18, %v4173_v12  ;;  %v4191_v24 = vadd.f32 %v1377_v19, %v4176_v13  ;;  %v1306_v25 = vpop.f32.mrb[2].mxu1  ;;  %v1379_v26 = vpop.f32.mrb[18].mxu0 }
 0x209   : > { %v1810_v28 = vmax.f32 %v4179_v16, %v4182_v17  ;;  %v4199_v29 = vadd.f32 %v1306_v25, %v4167_v10  ;;  %v4202_v30 = vadd.f32 %v1379_v26, %v4170_v11  ;;  %v1308_v31 = vpop.f32.mrb[3].mxu1  ;;  %v1381_v32 = vpop.f32.mrb[19].mxu0 }
 0x20a   : > { %v1811_v33 = vmax.f32 %v4188_v23, %v4191_v24  ;;  %v4207_v34 = vadd.f32 %v1308_v31, %v4173_v12  ;;  %v4210_v35 = vadd.f32 %v1381_v32, %v4176_v13 }
 0x20b   : > { %v1812_v36 = vmax.f32 %v4199_v29, %v4202_v30 }
 0x20c   : > { %v1813_v40 = vmax.f32 %v4207_v34, %v4210_v35 }
 0x20e   : > { %v1312_v42 = vpop.f32.mrb[4].mxu1  ;;  %v1385_v43 = vpop.f32.mrb[20].mxu0 }
 0x20f   : > { %v4223_v2 = vadd.f32 %v1312_v42, %v4167_v10  ;;  %v4226_v21 = vadd.f32 %v1385_v43, %v4170_v11  ;;  %v1314_v44 = vpop.f32.mrb[5].mxu1  ;;  %v1387_v20 = vpop.f32.mrb[21].mxu0 }
 0x210   : > { %v4229_v38 = vadd.f32 %v1314_v44, %v4173_v12  ;;  %v4232_v39 = vadd.f32 %v1387_v20, %v4176_v13  ;;  %v1316_v45 = vpop.f32.mrb[6].mxu1  ;;  %v1389_v46 = vpop.f32.mrb[22].mxu0 }
 0x211   : > { %v1814_v47 = vmax.f32 %v4223_v2, %v4226_v21  ;;  %v4237_v48 = vadd.f32 %v1316_v45, %v4167_v10  ;;  %v4240_v49 = vadd.f32 %v1389_v46, %v4170_v11  ;;  %v1318_v50 = vpop.f32.mrb[7].mxu1  ;;  %v1391_v51 = vpop.f32.mrb[23].mxu0 }
 0x212   : > { %v1815_v53 = vmax.f32 %v4229_v38, %v4232_v39  ;;  %v4248_v54 = vadd.f32 %v1318_v50, %v4173_v12  ;;  %v4251_v55 = vadd.f32 %v1391_v51, %v4176_v13 }
 0x216   : > { %v1322_v60 = vpop.f32.mrb[8].mxu1  ;;  %v1395_v61 = vpop.f32.mrb[24].mxu0 }
 0x217   : > { %v4267_v63 = vadd.f32 %v1322_v60, %v4167_v10  ;;  %v4270_v0 = vadd.f32 %v1395_v61, %v4170_v11  ;;  %v1324_v1 = vpop.f32.mrb[9].mxu1  ;;  %v1397_v4 = vpop.f32.mrb[25].mxu0 }
 0x218   : > { %v4273_v5 = vadd.f32 %v1324_v1, %v4173_v12  ;;  %v4276_v6 = vadd.f32 %v1397_v4, %v4176_v13  ;;  %v1326_v8 = vpop.f32.mrb[10].mxu1  ;;  %v1399_v9 = vpop.f32.mrb[26].mxu0 }
 0x219   : > { %v4281_v15 = vadd.f32 %v1326_v8, %v4167_v10  ;;  %v4284_v18 = vadd.f32 %v1399_v9, %v4170_v11  ;;  %v1328_v19 = vpop.f32.mrb[11].mxu1  ;;  %v1401_v22 = vpop.f32.mrb[27].mxu0  ;;  %v780_v9 = vsub.s32 5, %v4155_v3 }
 0x21a   : > { %v4289_v26 = vadd.f32 %v1328_v19, %v4173_v12  ;;  %v4292_v27 = vadd.f32 %v1401_v22, %v4176_v13 }
 0x21b   : > { %v4336_v22 = vrot.slane %v4162_v7, %v780_v9 }
 0x21e   : > { %v1332_v37 = vpop.f32.mrb[12].mxu1  ;;  %v1405_v41 = vpop.f32.mrb[28].mxu0 }
 0x21f   : > { %v4299_v42 = vadd.f32 %v1332_v37, %v4167_v10  ;;  %v4302_v43 = vadd.f32 %v1405_v41, %v4170_v11  ;;  %v1334_v44 = vpop.f32.mrb[13].mxu1  ;;  %v1407_v20 = vpop.f32.mrb[29].mxu0 }
 0x220   : > { %v4305_v45 = vadd.f32 %v1334_v44, %v4173_v12  ;;  %v4308_v46 = vadd.f32 %v1407_v20, %v4176_v13  ;;  %v1336_v50 = vpop.f32.mrb[14].mxu1  ;;  %v1409_v51 = vpop.f32.mrb[30].mxu0 }
 0x221   : > { %v4313_v56 = vadd.f32 %v1336_v50, %v4167_v10  ;;  %v4316_v59 = vadd.f32 %v1409_v51, %v4170_v11  ;;  %v1338_v60 = vpop.f32.mrb[15].mxu1  ;;  %v1411_v61 = vpop.f32.mrb[31].mxu0  ;;  %v776_v11 = vsub.s32 4, %v4155_v3 }
 0x222   : > { %v4321_v1 = vadd.f32 %v1338_v60, %v4173_v12  ;;  %v4324_v4 = vadd.f32 %v1411_v61, %v4176_v13 }
 0x223   : > { %v4333_v19 = vrot.slane %v4162_v7, %v776_v11 }
 0x224   : > { %5019 = vst [vmem:[#allocation5_spill] sm:$0xff] %v4321_v1  ;;  %5020 = vst [vmem:[#allocation6_spill] sm:$0xff] %v4324_v4 }
 0x246   : > { %v1448_v12 = vpop.f32.mrb[16].mxu1 }
 0x247   : > { %v1449_v13 = vadd.f32 %v1448_v12, %v4333_v19  ;;  %v1450_v37 = vpop.f32.mrb[17].mxu1  ;;  %v4339_v41 = vpop.f32.mrb[32].mxu0 }
 0x248   : > { %v1451_v44 = vadd.f32 %v1450_v37, %v4336_v22  ;;  %v1452_v20 = vpop.f32.mrb[18].mxu1  ;;  %v2002_v50 = vrot.slane %v4339_v41, 1  ;;  %v4344_v60 = vpop.f32.mrb[33].mxu0 }
 0x249   : > { %v1826_v7 = vmax.f32 %v1810_v28, %v1449_v13  ;;  %v1453_v61 = vadd.f32 %v1452_v20, %v4333_v19  ;;  %v1454_v11 = vpop.f32.mrb[19].mxu1  ;;  %v4352_v10 = vpop.f32.mrb[34].mxu0 }
 0x24a   : > { %v1827_v37 = vmax.f32 %v1811_v33, %v1451_v44  ;;  %v1455_v8 = vadd.f32 %v1454_v11, %v4336_v22  ;;  %v5001_v28 = vrot.slane %v4352_v10, 1  ;;  %v5000_v20 = vrot.slane %v4352_v10, 2  ;;  %v4362_v62 = vpop.f32.mrb[35].mxu0 }
 0x24b   : > { %v1842_v52 = vsub.f32 %v4179_v16, %v1826_v7  ;;  %v1938_v32 = vsub.f32 %v4182_v17, %v1826_v7  ;;  %v2071_v31 = vsub.f32 %v1449_v13, %v1826_v7  ;;  %v1828_v12 = vmax.f32 %v1812_v36, %v1453_v61 }
 0x24c   : > { %v1843_v9 = vsub.f32 %v4188_v23, %v1827_v37  ;;  %v1939_v33 = vsub.f32 %v4191_v24, %v1827_v37  ;;  %v2072_v11 = vsub.f32 %v1451_v44, %v1827_v37  ;;  %v1829_v25 = vmax.f32 %v1813_v40, %v1455_v8 }
 0x24d   : > { %v1858_v14 = vmul.f32 1.442695, %v1842_v52  ;;  %v1954_v58 = vmul.f32 1.442695, %v1938_v32  ;;  %v2087_v57 = vmul.f32 1.442695, %v2071_v31  ;;  %v1844_v16 = vsub.f32 %v4199_v29, %v1828_v12 }
 0x24e   : > { %v1860_v17 = vmul.f32 1.442695, %v1843_v9  ;;  %v1956_v13 = vmul.f32 1.442695, %v1939_v33  ;;  %v2089_v7 = vmul.f32 1.442695, %v2072_v11  ;;  %v1940_v51 = vsub.f32 %v4202_v30, %v1828_v12 }
 0x24f   : > { %3215 = vpow2.f32 %v1858_v14  ;;  %v1862_v36 = vmul.f32 1.442695, %v1844_v16  ;;  %v2073_v23 = vsub.f32 %v1453_v61, %v1828_v12  ;;  %v1845_v24 = vsub.f32 %v4207_v34, %v1829_v25  ;;  %v1458_v44 = vpop.f32.mrb[20].mxu1  ;;  %v4377_v37 = vpop.f32.mrb[36].mxu0 }
 0x250   : > { %3217 = vpow2.f32 %v1954_v58  ;;  %v1958_v40 = vmul.f32 1.442695, %v1940_v51  ;;  %v1941_v32 = vsub.f32 %v4210_v35, %v1829_v25  ;;  %v2074_v31 = vsub.f32 %v1455_v8, %v1829_v25  ;;  %v1460_v52 = vpop.f32.mrb[21].mxu1  ;;  %v4380_v29 = vpop.f32.mrb[37].mxu0 }
 0x251   : > { %3219 = vpow2.f32 %v2087_v57  ;;  %v2091_v9 = vmul.f32 1.442695, %v2073_v23  ;;  %v1864_v33 = vmul.f32 1.442695, %v1845_v24  ;;  %v1459_v30 = vadd.f32 %v1458_v44, %v4333_v19  ;;  %v1462_v14 = vpop.f32.mrb[22].mxu1  ;;  %v4383_v61 = vpop.f32.mrb[38].mxu0 }
 0x252   : > { %3221 = vpow2.f32 %v1860_v17  ;;  %v1960_v34 = vmul.f32 1.442695, %v1941_v32  ;;  %v2093_v12 = vmul.f32 1.442695, %v2074_v31  ;;  %v1461_v58 = vadd.f32 %v1460_v52, %v4336_v22  ;;  %v1464_v51 = vpop.f32.mrb[23].mxu1  ;;  %v4386_v11 = vpop.f32.mrb[39].mxu0 }
 0x253   : > { %3223 = vpow2.f32 %v1956_v13  ;;  %v1830_v35 = vmax.f32 %v1814_v47, %v1459_v30  ;;  %v1463_v57 = vadd.f32 %v1462_v14, %v4333_v19  ;;  %v4393_v25 = vadd.f32 %v1464_v51, %v4336_v22 }
 0x254   : > { %3225 = vpow2.f32 %v2089_v7  ;;  %v1831_v8 = vmax.f32 %v1815_v53, %v1461_v58  ;;  %v4404_v16 = vsel %vm2022_vm0, %v2002_v50, %v5001_v28  ;;  %v5021_v47 = vrot.slane %v4339_v41, 2 }
 0x255   : > { %3227 = vpow2.f32 %v1862_v36  ;;  %v1846_v13 = vsub.f32 %v4223_v2, %v1830_v35  ;;  %v1942_v53 = vsub.f32 %v4226_v21, %v1830_v35  ;;  %v2075_v7 = vsub.f32 %v1459_v30, %v1830_v35 }
 0x256   : > { %v4412_v17 = vsel %vm2153_vm1, %v5021_v47, %v5000_v20  ;;  %3229 = vpow2.f32 %v1958_v40  ;;  %v1847_v23 = vsub.f32 %v4229_v38, %v1831_v8  ;;  %v1943_v50 = vsub.f32 %v4232_v39, %v1831_v8  ;;  %v1468_v44 = vpop.f32.mrb[24].mxu1 }
 0x257   : > { %v2076_v24 = vsub.f32 %v1461_v58, %v1831_v8  ;;  %3231 = vpow2.f32 %v2091_v9  ;;  %v1866_v32 = vmul.f32 1.442695, %v1846_v13  ;;  %v1962_v31 = vmul.f32 1.442695, %v1942_v53  ;;  %v1470_v9 = vpop.f32.mrb[25].mxu1  ;;  %v4428_v30 = vpop.f32.mrb[40].mxu0 }
 0x258   : > { %v2095_v52 = vmul.f32 1.442695, %v2075_v7  ;;  %3233 = vpow2.f32 %v1864_v33  ;;  %v1868_v14 = vmul.f32 1.442695, %v1847_v23  ;;  %v1964_v51 = vmul.f32 1.442695, %v1943_v50 }
 0x259   : > { %v2097_v36 = vmul.f32 1.442695, %v2076_v24  ;;  %v3216_v47 = vpop.eup %3215  ;;  %3235 = vpow2.f32 %v1960_v34  ;;  %v5022_v2 = vmax.f32 %v4237_v48, %v4240_v49  ;;  %v5023_v38 = vmax.f32 %v4248_v54, %v4251_v55  ;;  %v4435_v8 = vpop.f32.mrb[26].mxu1 }
 0x25a   : > { %v4426_v40 = vadd.f32 %v1468_v44, %v4333_v19  ;;  %v3218_v33 = vpop.eup %3217  ;;  %3237 = vpow2.f32 %v2093_v12  ;;  %v1906_v58 = vmul.f32 %v3216_v47, %v4339_v41  ;;  %v4432_v34 = vadd.f32 %v1470_v9, %v4336_v22  ;;  %v4437_v13 = vpop.f32.mrb[41].mxu0 }
 0x25b   : > { %v1832_v21 = vmax.f32 %v5022_v2, %v1463_v57  ;;  %v1833_v39 = vmax.f32 %v5023_v38, %v4393_v25  ;;  %v3220_v53 = vpop.eup %3219  ;;  %v1986_v7 = vadd.f32 %v3218_v33, %v3216_v47  ;;  %3239 = vpow2.f32 %v1866_v32  ;;  %v4441_v24 = vpop.f32.mrb[27].mxu1 }
 0x25c   : > { %v4443_v12 = vpop.f32.mrb[42].mxu0  ;;  %v3222_v41 = vpop.eup %3221  ;;  %3241 = vpow2.f32 %v1962_v31 }
 0x25d   : > { %v1848_v23 = vsub.f32 %v4237_v48, %v1832_v21  ;;  %v1944_v50 = vsub.f32 %v4240_v49, %v1832_v21  ;;  %5024 = vst [vmem:[#allocation7_spill] sm:$0xff] %v4443_v12  ;;  %v2077_v44 = vsub.f32 %v1463_v57, %v1832_v21  ;;  %v1849_v2 = vsub.f32 %v4248_v54, %v1833_v39  ;;  %v4447_v9 = vpop.f32.mrb[43].mxu0  ;;  %v4449_v20 = vpop.eup %3223 }
 0x25e   : > { %v1945_v38 = vsub.f32 %v4251_v55, %v1833_v39  ;;  %5025 = vst [vmem:[#allocation8_spill] sm:$0xff] %v4447_v9  ;;  %v2119_v32 = vadd.f32 %v3220_v53, %v1986_v7  ;;  %3243 = vpow2.f32 %v2095_v52  ;;  %v4451_v49 = vpop.eup %3225  ;;  %v1987_v28 = vadd.f32 %v4449_v20, %v3222_v41  ;;  %v4454_v57 = vpop.f32.mrb[28].mxu1 }
 0x25f   : > { %v1870_v48 = vmul.f32 1.442695, %v1848_v23  ;;  %v1966_v47 = vmul.f32 1.442695, %v1944_v50  ;;  %3245 = vpow2.f32 %v1868_v14  ;;  %v2099_v35 = vmul.f32 1.442695, %v2077_v44  ;;  %v3228_v54 = vpop.eup %3227 }
 0x260   : > { %v1872_v31 = vmul.f32 1.442695, %v1849_v2  ;;  %3247 = vrcp.f32 %v2119_v32  ;;  %v1968_v55 = vmul.f32 1.442695, %v1945_v38  ;;  %v2078_v21 = vsub.f32 %v4393_v25, %v1833_v39  ;;  %v4460_v52 = vpop.f32.mrb[29].mxu1  ;;  %v4462_v7 = vpop.f32.mrb[44].mxu0 }
 0x261   : > { %v4458_v9 = vmul.f32 %v3222_v41, %v4344_v60  ;;  %5027 = vst [vmem:[#allocation10_spill] sm:$0xff] %v4462_v7  ;;  %v4464_v23 = vpop.eup %3229  ;;  %v2120_v14 = vadd.f32 %v4451_v49, %v1987_v28  ;;  %3249 = vpow2.f32 %v1964_v51  ;;  %v5028_v50 = vmax.f32 %v4267_v63, %v4270_v0  ;;  %v4474_v25 = vpop.f32.mrb[30].mxu1 }
 0x262   : > { %v4472_v2 = vmul.f32 %v3228_v54, %v4352_v10  ;;  %v4476_v39 = vpop.f32.mrb[45].mxu0  ;;  %v4478_v41 = vpop.eup %3231  ;;  %v1988_v38 = vadd.f32 %v4464_v23, %v3228_v54  ;;  %3251 = vpow2.f32 %v2097_v36  ;;  %v2101_v32 = vmul.f32 1.442695, %v2078_v21 }
 0x263   : > { %5026 = vst [vmem:[#allocation9_spill] sm:$0xff] %v4458_v9  ;;  %v1834_v44 = vmax.f32 %v5028_v50, %v4426_v40  ;;  %5029 = vst [vmem:[#allocation11_spill] sm:$0xff] %v4476_v39  ;;  %v2039_v28 = vmul.f32 %v3218_v33, %v4404_v16  ;;  %v4482_v51 = vpop.f32.mrb[31].mxu1  ;;  %v4484_v9 = vpop.f32.mrb[46].mxu0  ;;  %3253 = vrcp.f32 %v2120_v14  ;;  %v2170_v33 = vmul.f32 %v3220_v53, %v4412_v17 }
 0x264   : > { %v3234_v50 = vpop.eup %3233  ;;  %v4489_v4 = vpop.f32.mrb[47].mxu0  ;;  %v2121_v36 = vadd.f32 %v4478_v41, %v1988_v38  ;;  %3255 = vpow2.f32 %v1870_v48  ;;  %v5033_v53 = vrot.slane %v4362_v62, 1 }
 0x265   : > { %v1850_v7 = vsub.f32 %v4267_v63, %v1834_v44  ;;  %v1946_v12 = vsub.f32 %v4270_v0, %v1834_v44  ;;  %v2079_v39 = vsub.f32 %v4426_v40, %v1834_v44  ;;  %5030 = vst [vmem:[#allocation12_spill] sm:$0xff] %v4489_v4  ;;  %v4491_v1 = vpop.eup %3235  ;;  %v2055_v16 = vadd.f32 %v2039_v28, %v1906_v58 }
 0x266   : > { %v4495_v54 = vpop.eup %3237  ;;  %v1989_v21 = vadd.f32 %v4491_v1, %v3234_v50  ;;  %3257 = vpow2.f32 %v1966_v47  ;;  %v5031_v4 = vmax.f32 %v4273_v5, %v4276_v6  ;;  %v4506_v58 = vmul.f32 %v3234_v50, %v4362_v62 }
 0x267   : > { %v1874_v63 = vmul.f32 1.442695, %v1850_v7  ;;  %v1970_v14 = vmul.f32 1.442695, %v1946_v12  ;;  %v3240_v0 = vpop.eup %3239  ;;  %3259 = vrcp.f32 %v2121_v36  ;;  %v2103_v40 = vmul.f32 1.442695, %v2079_v39 }
 0x268   : > { %v2186_v44 = vadd.f32 %v2170_v33, %v2055_v16  ;;  %v1835_v38 = vmax.f32 %v5031_v4, %v4432_v34  ;;  %v4502_v48 = vpop.eup %3241  ;;  %v2122_v17 = vadd.f32 %v4495_v54, %v1989_v21  ;;  %3261 = vpow2.f32 %v2099_v35  ;;  %5032 = vst [vmem:[#allocation13_spill] sm:$0xff] %v4506_v58  ;;  %v4519_v35 = vpop.f32.mrb[48].mxu0 }
 0x269   : > { %v5034_v12 = vrot.slane %v4344_v60, 1  ;;  %v4514_v7 = vpop.eup %3243  ;;  %v1990_v39 = vadd.f32 %v4502_v48, %v3240_v0  ;;  %3263 = vpow2.f32 %v1872_v31  ;;  %v5014_v33 = vrot.slane %v4362_v62, 2  ;;  %v4526_v21 = vpop.f32.mrb[49].mxu0 }
 0x26a   : > { %v1851_v4 = vsub.f32 %v4273_v5, %v1835_v38  ;;  %v1947_v28 = vsub.f32 %v4276_v6, %v1835_v38  ;;  %v3246_v50 = vpop.eup %3245  ;;  %3265 = vrcp.f32 %v2122_v17  ;;  %v2080_v36 = vsub.f32 %v4432_v34, %v1835_v38  ;;  %5035 = vst [vmem:[#allocation14_spill] sm:$0xff] %v4526_v21  ;;  %v1807_v6 = vpop.f32.mrb[50].mxu0 }
 0x26b   : > { %v2038_v47 = vsel %vm2022_vm0, %v5034_v12, %v5033_v53  ;;  %v3248_v53 = vpop.eup %3247  ;;  %v2123_v31 = vadd.f32 %v4514_v7, %v1990_v39  ;;  %3267 = vpow2.f32 %v1968_v55 }
 0x26c   : > { %v4523_v16 = vmul.f32 %v4449_v20, %v2038_v47  ;;  %v1876_v5 = vmul.f32 1.442695, %v1851_v4  ;;  %v1972_v12 = vmul.f32 1.442695, %v1947_v28  ;;  %v4529_v58 = vpop.eup %3249  ;;  %3269 = vpow2.f32 %v2101_v32  ;;  %v1808_v47 = vpop.f32.mrb[51].mxu0 }
 0x26d   : > { %v4531_v17 = vmul.f32 %v3248_v53, %v2186_v44  ;;  %v2105_v34 = vmul.f32 1.442695, %v2080_v36  ;;  %v5036_v20 = vrot.slane %v4344_v60, 2  ;;  %v4539_v21 = vpop.eup %3251  ;;  %3271 = vrcp.f32 %v2123_v31 }
 0x26e   : > { %v1991_v55 = vadd.f32 %v4529_v58, %v3246_v50  ;;  %v1473_v32 = vadd.f32 %v4435_v8, %v4333_v19  ;;  %v4547_v44 = vpop.eup %3253  ;;  %3273 = vpow2.f32 %v1874_v63  ;;  %v4550_v60 = vmul.f32 %v3240_v0, %v4377_v37 }
 0x26f   : > { %v2169_v38 = vsel %vm2153_vm1, %v5036_v20, %v5014_v33  ;;  %v5012_v4 = vrot.slane %v4377_v37, 1  ;;  %v5013_v28 = vrot.slane %v4377_v37, 2  ;;  %v3256_v36 = vpop.eup %3255  ;;  %3275 = vpow2.f32 %v1970_v14 }
 0x270   : > { %v4543_v39 = vmul.f32 %v4451_v49, %v2169_v38  ;;  %v2124_v53 = vadd.f32 %v4539_v21, %v1991_v55  ;;  %v5037_v49 = vmax.f32 %v4281_v15, %v4284_v18  ;;  %v1475_v8 = vadd.f32 %v4441_v24, %v4336_v22  ;;  %v4560_v6 = vpop.eup %3257 }
 0x271   : > { %3277 = vpow2.f32 %v2103_v40  ;;  %v5038_v63 = vrot.slane %v4352_v10, 1  ;;  %v5039_v14 = vrot.slane %v4352_v10, 2  ;;  %v4575_v38 = vmul.f32 %v3246_v50, %v4380_v29  ;;  %v3260_v24 = vpop.eup %3259 }
 0x272   : > { %v1836_v31 = vmax.f32 %v5037_v49, %v1473_v32  ;;  %3279 = vrcp.f32 %v2124_v53  ;;  %v1992_v40 = vadd.f32 %v4560_v6, %v3256_v36  ;;  %v4580_v49 = vpop.eup %3261 }
 0x273   : > { %v2035_v0 = vsel %vm2022_vm0, %v5038_v63, %v5012_v4  ;;  %v2166_v20 = vsel %vm2153_vm1, %v5039_v14, %v5013_v28  ;;  %3281 = vpow2.f32 %v1876_v5  ;;  %v4584_v14 = vpop.eup %3263  ;;  %v5040_v5 = vmax.f32 %v4289_v26, %v4292_v27 }
 0x274   : > { %v1852_v47 = vsub.f32 %v4281_v15, %v1836_v31  ;;  %v1948_v55 = vsub.f32 %v4284_v18, %v1836_v31  ;;  %v2081_v63 = vsub.f32 %v1473_v32, %v1836_v31  ;;  %v2041_v10 = vmul.f32 %v4464_v23, %v2035_v0  ;;  %v4587_v33 = vpop.eup %3265 }
 0x275   : > { %v2172_v4 = vmul.f32 %v4478_v41, %v2166_v20  ;;  %v2125_v50 = vadd.f32 %v4580_v49, %v1992_v40  ;;  %3283 = vpow2.f32 %v1972_v12  ;;  %v1837_v32 = vmax.f32 %v5040_v5, %v1475_v8  ;;  %v4593_v23 = vpop.eup %3267 }
 0x276   : > { %v1878_v53 = vmul.f32 1.442695, %v1852_v47  ;;  %v1974_v28 = vmul.f32 1.442695, %v1948_v55  ;;  %3285 = vpow2.f32 %v2105_v34  ;;  %v2107_v15 = vmul.f32 1.442695, %v2081_v63  ;;  %v4599_v0 = vpop.eup %3269 }
 0x277   : > { %v2057_v18 = vadd.f32 %v2041_v10, %v4472_v2  ;;  %3287 = vrcp.f32 %v2125_v50  ;;  %v2007_v41 = vrot.slane %v4380_v29, 1  ;;  %v2140_v31 = vrot.slane %v4380_v29, 2  ;;  %v4604_v40 = vpop.eup %3271 }
 0x278   : > { %v1479_v12 = vadd.f32 %v4454_v57, %v4333_v19  ;;  %v1993_v34 = vadd.f32 %v4593_v23, %v4584_v14  ;;  %3289 = vpow2.f32 %v1878_v53  ;;  %v1853_v20 = vsub.f32 %v4289_v26, %v1837_v32  ;;  %5041 = vst [vmem:[#allocation15_spill] sm:$0xff] %v4604_v40  ;;  %v3274_v10 = vpop.eup %3273 }
 0x279   : > { %v2188_v2 = vadd.f32 %v2172_v4, %v2057_v18  ;;  %3291 = vpow2.f32 %v1974_v28  ;;  %v1949_v47 = vsub.f32 %v4292_v27, %v1837_v32  ;;  %v2082_v55 = vsub.f32 %v1475_v8, %v1837_v32  ;;  %v4616_v53 = vpop.eup %3275 }
 0x27a   : > { %v5042_v63 = vrot.slane %v4362_v62, 1  ;;  %v2126_v50 = vadd.f32 %v4599_v0, %v1993_v34  ;;  %3293 = vpow2.f32 %v2107_v15  ;;  %v1880_v26 = vmul.f32 1.442695, %v1853_v20 }
 0x27b   : > { %v4614_v4 = vmul.f32 %v3260_v24, %v2188_v2  ;;  %v1976_v28 = vmul.f32 1.442695, %v1949_v47  ;;  %v2109_v18 = vmul.f32 1.442695, %v2082_v55  ;;  %v5043_v8 = vrot.slane %v4362_v62, 2  ;;  %v4627_v32 = vpop.eup %3277 }
 0x27c   : > { %v2036_v57 = vsel %vm2022_vm0, %v5042_v63, %v2007_v41  ;;  %3295 = vrcp.f32 %v2126_v50  ;;  %v1994_v24 = vadd.f32 %v4616_v53, %v3274_v10  ;;  %v5044_v34 = vmax.f32 %v4299_v42, %v4302_v43  ;;  %v4636_v2 = vpop.eup %3279 }
 0x27d   : > { %v4619_v27 = vmul.f32 %v4491_v1, %v2036_v57  ;;  %v2167_v5 = vsel %vm2153_vm1, %v5043_v8, %v2140_v31  ;;  %3297 = vpow2.f32 %v1880_v26  ;;  %v4639_v62 = vmul.f32 %v3256_v36, %v4383_v61  ;;  %v4643_v55 = vpop.eup %3281 }
 0x27e   : > { %v4631_v15 = vmul.f32 %v4495_v54, %v2167_v5  ;;  %v1838_v1 = vmax.f32 %v5044_v34, %v1479_v12  ;;  %v5016_v20 = vrot.slane %v4383_v61, 1  ;;  %v5015_v47 = vrot.slane %v4383_v61, 2 }
 0x27f   : > { %v2127_v63 = vadd.f32 %v4627_v32, %v1994_v24  ;;  %3299 = vpow2.f32 %v1976_v28  ;;  %v4648_v50 = vpop.eup %3283  ;;  %v5045_v36 = vrot.slane %v4377_v37, 1  ;;  %v5046_v5 = vrot.slane %v4377_v37, 2 }
 0x280   : > { %v1854_v54 = vsub.f32 %v4299_v42, %v1838_v1  ;;  %v1950_v57 = vsub.f32 %v4302_v43, %v1838_v1  ;;  %3301 = vpow2.f32 %v2109_v18  ;;  %v2083_v26 = vsub.f32 %v1479_v12, %v1838_v1  ;;  %v4662_v28 = vpop.eup %3285 }
 0x281   : > { %v2033_v8 = vsel %vm2022_vm0, %v5045_v36, %v5016_v20  ;;  %v2164_v42 = vsel %vm2153_vm1, %v5046_v5, %v5015_v47  ;;  %3303 = vrcp.f32 %v2127_v63  ;;  %v1995_v43 = vadd.f32 %v4648_v50, %v4643_v55  ;;  %v4666_v24 = vpop.eup %3287 }
 0x282   : > { %v1882_v12 = vmul.f32 1.442695, %v1854_v54  ;;  %v1978_v18 = vmul.f32 1.442695, %v1950_v57  ;;  %5047 = vst [vmem:[#allocation16_spill] sm:$0xff] %v4666_v24  ;;  %v4669_v1 = vmul.f32 %v4502_v48, %v2033_v8  ;;  %v4672_v36 = vmul.f32 %v4514_v7, %v2164_v42  ;;  %v3290_v5 = vpop.eup %3289 }
 0x283   : > { %v2111_v34 = vmul.f32 1.442695, %v2083_v26  ;;  %v1481_v37 = vadd.f32 %v4460_v52, %v4336_v22  ;;  %v2128_v63 = vadd.f32 %v4662_v28, %v1995_v43  ;;  %v4679_v54 = vmul.f32 %v4584_v14, %v4386_v11  ;;  %v4682_v26 = vpop.eup %3291 }
 0x284   : > { %3305 = vpow2.f32 %v1882_v12  ;;  %v2009_v57 = vrot.slane %v4386_v11, 1  ;;  %v5048_v48 = vmax.f32 %v4305_v45, %v4308_v46  ;;  %v2142_v8 = vrot.slane %v4386_v11, 2  ;;  %v4690_v42 = vpop.eup %3293 }
 0x285   : > { %3307 = vpow2.f32 %v1978_v18  ;;  %v1483_v52 = vadd.f32 %v4474_v25, %v4333_v19  ;;  %v1996_v14 = vadd.f32 %v4682_v26, %v3290_v5  ;;  %v4698_v12 = vmul.f32 %v3274_v10, %v4428_v30 }
 0x286   : > { %v1839_v7 = vmax.f32 %v5048_v48, %v1481_v37  ;;  %3309 = vrcp.f32 %v2128_v63  ;;  %v2034_v43 = vsel %vm2022_vm0, %v2007_v41, %v2009_v57  ;;  %v4702_v19 = vpop.eup %3295  ;;  %v2165_v41 = vsel %vm2153_vm1, %v2140_v31, %v2142_v8 }
 0x287   : > { %3311 = vpow2.f32 %v2111_v34  ;;  %v2129_v25 = vadd.f32 %v4690_v42, %v1996_v14  ;;  %v4706_v63 = vmul.f32 %v4529_v58, %v2034_v43  ;;  %v5049_v10 = vmax.f32 %v4313_v56, %v4316_v59 }
 0x288   : > { %v1855_v18 = vsub.f32 %v4305_v45, %v1839_v7  ;;  %v1951_v11 = vsub.f32 %v4308_v46, %v1839_v7  ;;  %v2084_v48 = vsub.f32 %v1481_v37, %v1839_v7  ;;  %v3298_v45 = vpop.eup %3297  ;;  %v4716_v7 = vmul.f32 %v4539_v21, %v2165_v41 }
 0x289   : > { %v1840_v34 = vmax.f32 %v5049_v10, %v1483_v52  ;;  %v4718_v14 = vpop.eup %3299  ;;  %3313 = vrcp.f32 %v2129_v25 }
 0x28a   : > { %v1884_v47 = vmul.f32 1.442695, %v1855_v18  ;;  %v1980_v46 = vmul.f32 1.442695, %v1951_v11  ;;  %v2113_v37 = vmul.f32 1.442695, %v2084_v48  ;;  %v4722_v31 = vpop.eup %3301  ;;  %v1997_v20 = vadd.f32 %v4718_v14, %v3298_v45 }
 0x28b   : > { %v1856_v58 = vsub.f32 %v4313_v56, %v1840_v34  ;;  %v1952_v29 = vsub.f32 %v4316_v59, %v1840_v34  ;;  %v2085_v43 = vsub.f32 %v1483_v52, %v1840_v34  ;;  %v2010_v18 = vrot.slane %v4428_v30, 1  ;;  %v4727_v48 = vpop.eup %3303 }
 0x28c   : > { %3315 = vpow2.f32 %v1884_v47  ;;  %v2143_v11 = vrot.slane %v4428_v30, 2  ;;  %5050 = vst [vmem:[#allocation17_spill] sm:$0xff] %v4727_v48  ;;  %v2130_v56 = vadd.f32 %v4722_v31, %v1997_v20  ;;  %v5051_v59 = vrot.slane %v4383_v61, 1 }
 0x28d   : > { %3317 = vpow2.f32 %v1980_v46  ;;  %v1886_v21 = vmul.f32 1.442695, %v1856_v58  ;;  %v1982_v41 = vmul.f32 1.442695, %v1952_v29  ;;  %v2115_v25 = vmul.f32 1.442695, %v2085_v43 }
 0x28e   : > { %3319 = vpow2.f32 %v2113_v37  ;;  %v2031_v52 = vsel %vm2022_vm0, %v5051_v59, %v2010_v18  ;;  %v5052_v47 = vrot.slane %v4383_v61, 2  ;;  %v3306_v30 = vpop.eup %3305  ;;  %v1485_v20 = vadd.f32 %v4482_v51, %v4336_v22  ;;  %v5057_v51 = vld [vmem:[#allocation7_spill] sm:$0xff] }
 0x28f   : > { %3321 = vpow2.f32 %v1886_v21  ;;  %v4739_v34 = vmul.f32 %v4560_v6, %v2031_v52  ;;  %v4746_v37 = vpop.eup %3307  ;;  %v4750_v61 = vmul.f32 %v4643_v55, %v4437_v13  ;;  %v2011_v58 = vrot.slane %v4437_v13, 1  ;;  %v5055_v21 = vld [vmem:[#allocation6_spill] sm:$0xff] }
 0x290   : > { %v2162_v10 = vsel %vm2153_vm1, %v5052_v47, %v2143_v11  ;;  %3323 = vrcp.f32 %v2130_v56  ;;  %v2144_v29 = vrot.slane %v4437_v13, 2  ;;  %v4754_v43 = vpop.eup %3309  ;;  %v1998_v6 = vadd.f32 %v4746_v37, %v3306_v30 }
 0x291   : > { %v4742_v46 = vmul.f32 %v4580_v49, %v2162_v10  ;;  %5053 = vst [vmem:[#allocation18_spill] sm:$0xff] %v4754_v43  ;;  %3325 = vpow2.f32 %v1982_v41  ;;  %v5054_v49 = vld [vmem:[#allocation5_spill] sm:$0xff]  ;;  %v4761_v52 = vmul.f32 %v3290_v5, %v5057_v51  ;;  %v4763_v56 = vpop.eup %3311  ;;  %v2032_v55 = vsel %vm2022_vm0, %v2009_v57, %v2011_v58 }
 0x292   : > { %v5056_v59 = vmax.f32 %v5054_v49, %v5055_v21  ;;  %3327 = vpow2.f32 %v2115_v25  ;;  %v2163_v13 = vsel %vm2153_vm1, %v2142_v8, %v2144_v29  ;;  %v2012_v47 = vrot.slane %v5057_v51, 1 }
 0x293   : > { %v2131_v41 = vadd.f32 %v4763_v56, %v1998_v6  ;;  %v4774_v5 = vmul.f32 %v4593_v23, %v2032_v55  ;;  %v4777_v25 = vmul.f32 %v4599_v0, %v2163_v13  ;;  %v2145_v8 = vrot.slane %v5057_v51, 2  ;;  %v4782_v43 = vpop.eup %3313  ;;  %v5059_v0 = vld [vmem:[#allocation8_spill] sm:$0xff] }
 0x294   : > { %v1841_v22 = vmax.f32 %v5056_v59, %v1485_v20  ;;  %v2029_v57 = vsel %vm2022_vm0, %v2010_v18, %v2012_v47  ;;  %5058 = vst [vmem:[#allocation5_spill] sm:$0xff] %v4782_v43  ;;  %v2013_v18 = vrot.slane %v5059_v0, 1  ;;  %v2146_v55 = vrot.slane %v5059_v0, 2  ;;  %v5065_v43 = vld [vmem:[#allocation12_spill] sm:$0xff] }
 0x295   : > { %3329 = vrcp.f32 %v2131_v41  ;;  %v2160_v23 = vsel %vm2153_vm1, %v2143_v11, %v2145_v8  ;;  %v2061_v3 = vadd.f32 %v4739_v34, %v4639_v62 }
 0x296   : > { %v1857_v10 = vsub.f32 %v5054_v49, %v1841_v22  ;;  %v1953_v59 = vsub.f32 %v5055_v21, %v1841_v22  ;;  %v2086_v48 = vsub.f32 %v1485_v20, %v1841_v22  ;;  %v3316_v40 = vpop.eup %3315  ;;  %v4785_v20 = vmul.f32 %v4616_v53, %v2029_v57 }
 0x297   : > { %v4790_v21 = vmul.f32 %v3298_v45, %v5059_v0  ;;  %v3318_v22 = vpop.eup %3317  ;;  %v4794_v51 = vmul.f32 %v4627_v32, %v2160_v23  ;;  %v2030_v11 = vsel %vm2022_vm0, %v2011_v58, %v2013_v18  ;;  %v2161_v32 = vsel %vm2153_vm1, %v2144_v29, %v2146_v55  ;;  %v5063_v23 = vld [vmem:[#allocation11_spill] sm:$0xff] }
 0x298   : > { %v1888_v6 = vmul.f32 1.442695, %v1857_v10  ;;  %v1984_v24 = vmul.f32 1.442695, %v1953_v59  ;;  %v2117_v49 = vmul.f32 1.442695, %v2086_v48  ;;  %v3320_v53 = vpop.eup %3319  ;;  %v1999_v41 = vadd.f32 %v3318_v22, %v3316_v40 }
 0x299   : > { %v5060_v48 = vld [vmem:[#allocation10_spill] sm:$0xff]  ;;  %v3322_v10 = vpop.eup %3321  ;;  %v4804_v59 = vmul.f32 %v4648_v50, %v2030_v11  ;;  %v4817_v0 = vmul.f32 %v3316_v40, %v5063_v23 }
 0x29a   : > { %3331 = vpow2.f32 %v1888_v6  ;;  %v4798_v13 = vmul.f32 %v3306_v30, %v5060_v48  ;;  %v2014_v45 = vrot.slane %v5060_v48, 1  ;;  %v2147_v57 = vrot.slane %v5060_v48, 2  ;;  %v4809_v30 = vpop.eup %3323 }
 0x29b   : > { %3333 = vpow2.f32 %v1984_v24  ;;  %5062 = vst [vmem:[#allocation7_spill] sm:$0xff] %v4809_v30  ;;  %v2132_v6 = vadd.f32 %v3320_v53, %v1999_v41  ;;  %v4812_v24 = vmul.f32 %v4662_v28, %v2161_v32  ;;  %v2015_v48 = vrot.slane %v5063_v23, 1 }
 0x29c   : > { %5061 = vst [vmem:[#allocation6_spill] sm:$0xff] %v4798_v13  ;;  %3335 = vpow2.f32 %v2117_v49  ;;  %v2027_v58 = vsel %vm2022_vm0, %v2012_v47, %v2014_v45  ;;  %v3326_v49 = vpop.eup %3325  ;;  %v2158_v29 = vsel %vm2153_vm1, %v2145_v8, %v2147_v57  ;;  %v2148_v41 = vrot.slane %v5063_v23, 2 }
 0x29d   : > { %v4820_v50 = vmul.f32 %v4682_v26, %v2027_v58  ;;  %v3328_v11 = vpop.eup %3327  ;;  %3337 = vrcp.f32 %v2132_v6  ;;  %v2000_v28 = vadd.f32 %v3326_v49, %v3322_v10  ;;  %v4827_v32 = vmul.f32 %v4690_v42, %v2158_v29 }
 0x29e   : > { %v1920_v40 = vmul.f32 %v3322_v10, %v4484_v9  ;;  %v2028_v47 = vsel %vm2022_vm0, %v2013_v18, %v2015_v48  ;;  %v2159_v26 = vsel %vm2153_vm1, %v2146_v55, %v2148_v41  ;;  %v2016_v8 = vrot.slane %v4484_v9, 1 }
 0x29f   : > { %5064 = vst [vmem:[#allocation8_spill] sm:$0xff] %v4827_v32  ;;  %v2149_v58 = vrot.slane %v4484_v9, 2  ;;  %v2133_v13 = vadd.f32 %v3328_v11, %v2000_v28  ;;  %v2050_v23 = vmul.f32 %v4718_v14, %v2028_v47  ;;  %v2181_v6 = vmul.f32 %v4722_v31, %v2159_v26  ;;  %v4839_v29 = vpop.eup %3329 }
 0x2a0   : > { %v2017_v42 = vrot.slane %v5065_v43, 1  ;;  %5066 = vst [vmem:[#allocation10_spill] sm:$0xff] %v4839_v29  ;;  %v2025_v10 = vsel %vm2022_vm0, %v2014_v45, %v2016_v8  ;;  %v2150_v55 = vrot.slane %v5065_v43, 2  ;;  %v2018_v32 = vrot.slane %v4519_v35, 1 }
 0x2a1   : > { %v2156_v18 = vsel %vm2153_vm1, %v2147_v57, %v2149_v58  ;;  %3339 = vrcp.f32 %v2133_v13  ;;  %v4848_v9 = vmul.f32 %v4746_v37, %v2025_v10  ;;  %v2151_v26 = vrot.slane %v4519_v35, 2 }
 0x2a2   : > { %v4851_v14 = vmul.f32 %v4763_v56, %v2156_v18  ;;  %v2026_v31 = vsel %vm2022_vm0, %v2015_v48, %v2017_v42  ;;  %v2157_v45 = vsel %vm2153_vm1, %v2148_v41, %v2150_v55  ;;  %v2023_v57 = vsel %vm2022_vm0, %v2016_v8, %v2018_v32  ;;  %v5069_v56 = vld [vmem:[#allocation9_spill] sm:$0xff] }
 0x2a3   : > { %5067 = vst [vmem:[#allocation11_spill] sm:$0xff] %v4848_v9  ;;  %v2052_v47 = vmul.f32 %v3318_v22, %v2026_v31  ;;  %v2183_v10 = vmul.f32 %v3320_v53, %v2157_v45  ;;  %v2053_v29 = vmul.f32 %v3326_v49, %v2023_v57  ;;  %v2056_v18 = vadd.f32 %v4523_v16, %v5069_v56  ;;  %v5070_v31 = vld [vmem:[#allocation13_spill] sm:$0xff]  ;;  %v5071_v9 = vld [vmem:[#allocation14_spill] sm:$0xff] }
 0x2a4   : > { %5068 = vst [vmem:[#allocation12_spill] sm:$0xff] %v4851_v14  ;;  %v3332_v28 = vpop.eup %3331  ;;  %v2154_v22 = vsel %vm2153_vm1, %v2149_v58, %v2151_v26  ;;  %v2058_v41 = vadd.f32 %v4619_v27, %v5070_v31  ;;  %v2019_v32 = vrot.slane %v5071_v9, 1  ;;  %v2234_v58 = vpack.c.bf16 %v4614_v4, %v4531_v17  ;;  %v5079_v56 = vld [vmem:[#allocation6_spill] sm:$0xff] }
 0x2a5   : > { %v3334_v13 = vpop.eup %3333  ;;  %v1921_v37 = vmul.f32 %v3332_v28, %v5065_v43  ;;  %v2069_v8 = vadd.f32 %v2053_v29, %v1920_v40  ;;  %v2184_v35 = vmul.f32 %v3328_v11, %v2154_v22  ;;  %v2187_v30 = vadd.f32 %v4543_v39, %v2056_v18 }
 0x2a6   : > { %v3336_v14 = vpop.eup %3335  ;;  %v2001_v48 = vadd.f32 %v3334_v13, %v3332_v28  ;;  %v2152_v43 = vrot.slane %v5071_v9, 2  ;;  %v2189_v49 = vadd.f32 %v4631_v15, %v2058_v41  ;;  %v2024_v16 = vsel %vm2022_vm0, %v2017_v42, %v2019_v32  ;;  %v5076_v9 = vld [vmem:[#allocation8_spill] sm:$0xff] }
 0x2a7   : > { %v3338_v28 = vpop.eup %3337  ;;  %v2219_v27 = vmul.f32 %v4547_v44, %v2187_v30  ;;  %v2054_v45 = vmul.f32 %v3334_v13, %v2024_v16  ;;  %v2060_v39 = vadd.f32 %v4706_v63, %v4575_v38  ;;  %v2062_v42 = vadd.f32 %v4774_v5, %v4679_v54  ;;  %v5078_v13 = vld [vmem:[#allocation5_spill] sm:$0xff] }
 0x2a8   : > { %v2134_v53 = vadd.f32 %v3336_v14, %v2001_v48  ;;  %v2155_v11 = vsel %vm2153_vm1, %v2150_v55, %v2152_v43  ;;  %v2221_v40 = vmul.f32 %v4587_v33, %v2189_v49  ;;  %v2059_v44 = vadd.f32 %v4669_v1, %v4550_v60  ;;  %v5075_v55 = vld [vmem:[#allocation7_spill] sm:$0xff] }
 0x2a9   : > { %v2185_v15 = vmul.f32 %v3336_v14, %v2155_v11  ;;  %v2070_v29 = vadd.f32 %v2054_v45, %v1921_v37  ;;  %v2191_v17 = vadd.f32 %v4716_v7, %v2060_v39  ;;  %v2193_v30 = vadd.f32 %v4777_v25, %v2062_v42  ;;  %v5072_v25 = vld [vmem:[#allocation15_spill] sm:$0xff]  ;;  %v5077_v14 = vld [vmem:[#allocation17_spill] sm:$0xff] }
 0x2aa   : > { %3341 = vrcp.f32 %v2134_v53  ;;  %v2235_v4 = vpack.c.bf16 %v2221_v40, %v2219_v27  ;;  %v2064_v38 = vadd.f32 %v4804_v59, %v4750_v61  ;;  %v2066_v33 = vadd.f32 %v2050_v23, %v4790_v21  ;;  %v5082_v53 = vld [vmem:[#allocation10_spill] sm:$0xff] }
 0x2ab   : > { %v3340_v63 = vpop.eup %3339  ;;  %v2223_v54 = vmul.f32 %v4636_v2, %v2191_v17  ;;  %v2190_v5 = vadd.f32 %v4672_v36, %v2059_v44  ;;  %v2192_v7 = vadd.f32 %v4742_v46, %v2061_v3  ;;  %v2063_v60 = vadd.f32 %v4785_v20, %v4698_v12  ;;  %v5073_v2 = vld [vmem:[#allocation16_spill] sm:$0xff]  ;;  %v5074_v12 = vld [vmem:[#allocation18_spill] sm:$0xff] }
 0x2ac   : > { %2466 = vmatprep.mubr.bf16.mxu1 %v2235_v4  ;;  %v2225_v62 = vmul.f32 %v4702_v19, %v2193_v30  ;;  %v2195_v1 = vadd.f32 %v4812_v24, %v2064_v38  ;;  %v2197_v34 = vadd.f32 %v2181_v6, %v2066_v33  ;;  %v2065_v61 = vadd.f32 %v4820_v50, %v4761_v52  ;;  %v5081_v31 = vld [vmem:[#allocation12_spill] sm:$0xff] }
 0x2ad   : > { %2467 = vmatmul.mubr.bf16.vlgmr.msra.gmra.mrb[32].mxu1 %v2234_v58  ;;  %v2222_v21 = vmul.f32 %v5072_v25, %v2190_v5  ;;  %v2224_v59 = vmul.f32 %v5073_v2, %v2192_v7  ;;  %v2194_v36 = vadd.f32 %v4794_v51, %v2063_v60  ;;  %v2068_v46 = vadd.f32 %v2052_v47, %v4817_v0  ;;  %v5080_v51 = vld [vmem:[#allocation11_spill] sm:$0xff] }
 0x2ae   : > { %v2237_v23 = vpack.c.bf16 %v2225_v62, %v2223_v54  ;;  %v2227_v20 = vmul.f32 %v5074_v12, %v2195_v1  ;;  %v2229_v19 = vmul.f32 %v5075_v55, %v2197_v34  ;;  %v2196_v24 = vadd.f32 %v5076_v9, %v2065_v61 }
 0x2af   : > { %v2236_v6 = vpack.c.bf16 %v2224_v59, %v2222_v21  ;;  %v2226_v57 = vmul.f32 %v5077_v14, %v2194_v36  ;;  %v2199_v52 = vadd.f32 %v2183_v10, %v2068_v46  ;;  %v2201_v50 = vadd.f32 %v2185_v15, %v2070_v29 }
 0x2b0   : > { %2476 = vmatprep.mubr.bf16.mxu1 %v2237_v23  ;;  %v2239_v26 = vpack.c.bf16 %v2229_v19, %v2227_v20  ;;  %v2228_v37 = vmul.f32 %v5078_v13, %v2196_v24  ;;  %v2067_v18 = vadd.f32 %v5080_v51, %v5079_v56  ;;  %v2200_v0 = vadd.f32 %v2184_v35, %v2069_v8 }
 0x2b1   : > { %v2231_v47 = vmul.f32 %v3338_v28, %v2199_v52 }
 0x2b2   : > { %v2238_v22 = vpack.c.bf16 %v2228_v37, %v2226_v57  ;;  %v2198_v41 = vadd.f32 %v5081_v31, %v2067_v18  ;;  %v2232_v32 = vmul.f32 %v3340_v63, %v2200_v0 }
 0x2b4   : > { %v3342_v48 = vpop.eup %3341  ;;  %v2230_v10 = vmul.f32 %v5082_v53, %v2198_v41 }
 0x2b5   : > { %v2233_v43 = vmul.f32 %v3342_v48, %v2201_v50  ;;  %2477 = vmatmul.mubr.bf16.gmra.mrb[36].mxu1 %v2236_v6 }
 0x2b6   : > { %2486 = vmatprep.mubr.bf16.mxu1 %v2239_v26  ;;  %v2240_v16 = vpack.c.bf16 %v2232_v32, %v2230_v10 }
 0x2b7   : > { %v2241_v49 = vpack.c.bf16 %v2233_v43, %v2231_v47 }
 0x2bd   : > { %2487 = vmatmul.mubr.bf16.gmra.mrb[40].mxu1 %v2238_v22 }
 0x2be   : > { %2496 = vmatprep.mubr.bf16.mxu1 %v2241_v49 }
 0x2c5   : > { %2497 = vmatmul.mubr.bf16.gmra.mrb[44].mxu1 %v2240_v16 }
 0x380   : > { %v2468_v8 = vpop.f32.mrb[32].mxu1 }
 0x381   : > { %2507 = vst [vmem:[%s4917_s20] sm:$0xff] %v2468_v8  ;;  %v2470_v35 = vpop.f32.mrb[33].mxu1 }
 0x382   : > { %2508 = vst [vmem:[%s4917_s20 + $0x8] sm:$0xff] %v2470_v35  ;;  %v2472_v58 = vpop.f32.mrb[34].mxu1 }
 0x383   : > { %2509 = vst [vmem:[%s4917_s20 + $0x10] sm:$0xff] %v2472_v58  ;;  %v2474_v28 = vpop.f32.mrb[35].mxu1 }
 0x384   : > { %2510 = vst [vmem:[%s4917_s20 + $0x18] sm:$0xff] %v2474_v28 }
 0x388   : > { %v2478_v27 = vpop.f32.mrb[36].mxu1 }
 0x389   : > { %2511 = vst [vmem:[%s4917_s20 + $0x20] sm:$0xff] %v2478_v27  ;;  %v2480_v45 = vpop.f32.mrb[37].mxu1 }
 0x38a   : > { %2512 = vst [vmem:[%s4917_s20 + $0x28] sm:$0xff] %v2480_v45  ;;  %v2482_v11 = vpop.f32.mrb[38].mxu1 }
 0x38b   : > { %2513 = vst [vmem:[%s4917_s20 + $0x30] sm:$0xff] %v2482_v11  ;;  %v2484_v39 = vpop.f32.mrb[39].mxu1 }
 0x38c   : > { %2514 = vst [vmem:[%s4917_s20 + $0x38] sm:$0xff] %v2484_v39 }
 0x390   : > { %v2488_v40 = vpop.f32.mrb[40].mxu1 }
 0x391   : > { %2515 = vst [vmem:[%s4917_s20 + $0x40] sm:$0xff] %v2488_v40  ;;  %v2490_v15 = vpop.f32.mrb[41].mxu1 }
 0x392   : > { %2516 = vst [vmem:[%s4917_s20 + $0x48] sm:$0xff] %v2490_v15  ;;  %v2492_v42 = vpop.f32.mrb[42].mxu1 }
 0x393   : > { %2517 = vst [vmem:[%s4917_s20 + $0x50] sm:$0xff] %v2492_v42  ;;  %v2494_v29 = vpop.f32.mrb[43].mxu1 }
 0x394   : > { %2518 = vst [vmem:[%s4917_s20 + $0x58] sm:$0xff] %v2494_v29 }
 0x398   : > { %v2498_v17 = vpop.f32.mrb[44].mxu1 }
 0x399   : > { %2519 = vst [vmem:[%s4917_s20 + $0x60] sm:$0xff] %v2498_v17  ;;  %v2500_v44 = vpop.f32.mrb[45].mxu1 }
 0x39a   : > { %2520 = vst [vmem:[%s4917_s20 + $0x68] sm:$0xff] %v2500_v44  ;;  %v2502_v3 = vpop.f32.mrb[46].mxu1 }
 0x39b   : > { %2521 = vst [vmem:[%s4917_s20 + $0x70] sm:$0xff] %v2502_v3  ;;  %v2504_v4 = vpop.f32.mrb[47].mxu1 }
 0x39c   : > { %2522 = vst [vmem:[%s4917_s20 + $0x78] sm:$0xff] %v2504_v4 }
 0x39d   : > { %3356 = shalt.err (!%p3353_p5)
}
 0x39e   : > { %s3357_s16 = scalar_lea.hbm %s4937_s30, 2048  ;;  %s3361_s20 = scalar_lea.hbm %s4999_s7, 4096 }
 0x39f   : > { %p3358_p6 = scmp.ne.s32.totalorder %s4937_s30, %s3357_s16  ;;  %p3362_p10 = scmp.lt.u32.totalorder %s4937_s30, %s4999_s7 }
 0x3a0   : > { %p3363_p11 = scmp.lt.u32.totalorder %s3361_s20, %s3357_s16  ;;  %p3365_p13 = scmp.lt.u32.totalorder %s3357_s16, %s4937_s30 }
 0x3a1   : > { %p3359_p7 = pnand %p3358_p6, %p3506_p4 }
 0x3a2   : > { %p3364_p12 = por %p3363_p11, %p3362_p10 }
 0x3a3   : > { %p3360_p9 = pneg %p3359_p7 }
 0x3a4   : > { %p3366_p0 = por %p3365_p13, %p3364_p12 }
 0x3a6   : > { %p3367_p1 = pnand %p3366_p0, %p3360_p9 }
 0x3a8   : > { %3370 = shalt.err (!%p3367_p1)
}
 0x3a9   : > { %s3424_s23 = smov 256   ;;  %s3425_s8 = smov 16  }
 0x3aa   : > { %2855 = dma.vmem_to_hbm [thread:$0]  (%p3506_p4), %s4939_s22, 2048, %s4937_s30, %s4946_s27, %s3424_s23, %s3424_s23, %s3425_s8  }
 0x3ab PF: > { %p2861_p2 = scmp.ge.s32.totalorder %s3421_s29, 2  ;;  %s2555_s10 = sand.u32 1, %s3401_s24  }
 0x3ac   : > { %s2556_s18 = scalar_lea.sflag [#allocation3], %s2555_s10 }
 0x3ad   : > { %p2858_p3 = pnand %p2861_p2, %p3513_p8 }
 0x3af   : > { %3396 = dma.done.wait (!%p2858_p3), %s2556_s18, 2048  }
 0x3b0   : > { %3398 = vsyncadd (!%p2858_p3), %s2556_s18, 4294965248  ;;  %s20_s29 = sadd.s32 1, %s3421_s29   ;;  %s5083_s24 = smov %s3405_s25 }
 0x3b1   : > { %p17_p5 = scmp.ge.s32.totalorder %s20_s29, 4   ;;  %s5084_s25 = smov %s3409_s26 }
 0x3b2   : > { %s5085_s26 = smov %s3519_s14  ;;  %s5086_s27 = smov %s3417_s28 }
 0x3b3   : > { %s5087_s28 = smov %s5089_s9  ;;  %19 = sbr.rel (!%p17_p5) target bundleno = 4 (0x4), region = 87 }
 0x3ba   :  { %2561 = vsyncpa [#allocation3], 1 }
 0x3bb   :  { %2563 = vsyncpa [#allocation3 + $0x1], 1 }

</bundles_post_ra>
